<compile_context>
chip_gen: v6e
topology: v6e:2x2x1
jax: 0.10.0
libtpu: 0.0.40
codegen_flags: <defaults>
</compile_context>

<pallas_src>
import numpy as np

import jax
import jax.numpy as jnp
from jax import lax
from jax.experimental import pallas as pl
from jax.experimental.pallas import tpu as pltpu


def fused_conv3d(x, w_cat, b_cat):
    """3-D conv, kernel 3x3x3, stride 1, padding 1.

    x: (N, Cin, D, H, W) f32; w_cat: (Cout3, Cin, 3, 3, 3); b_cat: (Cout3,).
    Returns (N, Cout3, D, H, W) f32.
    """
    N, Cin, D, H, W = x.shape
    Cout3 = w_cat.shape[0]
    HW = H * W
    DHW = D * H * W
    K = 27 * Cin

    # Lane-aligned halo (>= max |tap offset| = HW + W + 1) on both sides of the
    # flattened volume.
    PAD = ((HW + W + 1 + 127) // 128) * 128
    PADW = DHW + 2 * PAD

    # ---------------- host-side (trace-time) prep ----------------
    # bf16 operands; accumulation stays f32 inside the kernel.
    x_flat = x.reshape(N, Cin, DHW).astype(jnp.bfloat16)
    w_mat = (jnp.transpose(w_cat, (0, 2, 3, 4, 1))
             .reshape(Cout3, K).astype(jnp.bfloat16))          # tap-major, then Cin
    b_col = b_cat.reshape(Cout3, 1).astype(jnp.float32)

    # 9 H/W boundary masks (one per (kh, kw)); D boundaries are covered by the
    # zero halo.  Built with numpy so they are baked compile-time constants.
    h_i = np.arange(H).reshape(1, H, 1)
    w_i = np.arange(W).reshape(1, 1, W)
    rows = []
    for kh in range(3):
        for kw in range(3):
            vh = (h_i + kh - 1 >= 0) & (h_i + kh - 1 < H)
            vw = (w_i + kw - 1 >= 0) & (w_i + kw - 1 < W)
            rows.append(np.broadcast_to(vh & vw, (D, H, W)).reshape(DHW))
    m9 = jnp.asarray(np.stack(rows, axis=0), dtype=jnp.bfloat16)   # (9, DHW)

    # ---------------- kernel ----------------
    def conv3d_kernel(x_ref, m_ref, w_ref, b_ref, o_ref, xbuf_ref, patch_ref):
        # x_ref:     (Cin, DHW)   bf16 flattened volume for one batch
        # m_ref:     (9, DHW)     bf16 H/W boundary masks
        # w_ref:     (Cout3, K)   bf16 im2col weight matrix
        # b_ref:     (Cout3, 1)   f32 bias
        # o_ref:     (Cout3, DHW) f32 output for one batch
        # xbuf_ref:  (Cin, PADW)  bf16 lane-halo scratch
        # patch_ref: (K, DHW)     bf16 im2col patch scratch

        # Zero the halos every step: cheap (2 x (Cin, PAD) bf16) and
        # megacore-safe (a program_id(0)==0 guard would skip init on the core
        # that gets the second half of the parallel batch axis).
        halo0 = jnp.zeros((Cin, PAD), xbuf_ref.dtype)
        xbuf_ref[:, :PAD] = halo0
        xbuf_ref[:, PAD + DHW:] = halo0
        xbuf_ref[:, PAD:PAD + DHW] = x_ref[...]

        # Build the im2col patch: one lane-shifted, boundary-masked (Cin, DHW)
        # bf16 slab per tap.  D-out-of-range taps land in the zero halo.
        for t in range(27):
            kd, kh, kw = t // 9, (t // 3) % 3, t % 3
            s = PAD + (kd - 1) * HW + (kh - 1) * W + (kw - 1)
            win = xbuf_ref[:, s:s + DHW]                        # (Cin, DHW)
            if (kh, kw) != (1, 1):                              # H/W boundary mask
                r = 3 * kh + kw
                win = win * m_ref[r:r + 1, :]
            patch_ref[t * Cin:(t + 1) * Cin, :] = win

        # Single fused MXU matmul over K = 27*Cin, bf16 x bf16 -> f32 accumulate.
        acc = jnp.dot(w_ref[...], patch_ref[...],
                      preferred_element_type=jnp.float32)       # (Cout3, DHW)
        o_ref[...] = (acc + b_ref[...]).astype(o_ref.dtype)

    flops = 2 * N * Cout3 * K * DHW
    bytes_accessed = (x_flat.size * 2 + m9.size * 2 + w_mat.size * 2
                      + b_col.size * 4 + N * Cout3 * DHW * 4)

    out_flat = pl.pallas_call(
        conv3d_kernel,
        out_shape=jax.ShapeDtypeStruct((N, Cout3, DHW), jnp.float32),
        grid_spec=pltpu.PrefetchScalarGridSpec(
            num_scalar_prefetch=0,
            grid=(N,),
            in_specs=[
                pl.BlockSpec((None, Cin, DHW), lambda n: (n, 0, 0)),
                pl.BlockSpec((9, DHW), lambda n: (0, 0)),
                pl.BlockSpec((Cout3, K), lambda n: (0, 0)),
                pl.BlockSpec((Cout3, 1), lambda n: (0, 0)),
            ],
            out_specs=pl.BlockSpec((None, Cout3, DHW), lambda n: (n, 0, 0)),
            scratch_shapes=[
                pltpu.VMEM((Cin, PADW), jnp.bfloat16),
                pltpu.VMEM((K, DHW), jnp.bfloat16),
            ],
        ),
        compiler_params=pltpu.CompilerParams(
            dimension_semantics=("parallel",),
            vmem_limit_bytes=32 * 1024 * 1024,
        ),
        cost_estimate=pl.CostEstimate(
            flops=flops, transcendentals=0, bytes_accessed=bytes_accessed),
    )(x_flat, m9, w_mat, b_col)

    return out_flat.reshape(N, Cout3, D, H, W)


def net_forward(x, weights, biases):
    """Net.forward(x): cat([conv1(x), conv2(x), conv3(x)], dim=1).

    transIV_concat: identical to one Conv3d with the three weights/biases
    concatenated along the out-channel dim, so one fused conv suffices (the
    fuse=True path of the module computes exactly the same thing).
    """
    w_cat = jnp.concatenate(list(weights), axis=0)
    b_cat = jnp.concatenate(list(biases), axis=0)
    return fused_conv3d(x, w_cat, b_cat)


if __name__ == "__main__":
    # Small shapes consistent with the module: batch=2, in_channel=4,
    # out_channel=4, spatial D=H=W=8.
    N, Cin, Cout, D, H, W = 2, 4, 4, 8, 8, 8

    key = jax.random.PRNGKey(0)
    kx, k1, k2, k3, kb1, kb2, kb3 = jax.random.split(key, 7)

    x = jax.random.normal(kx, (N, Cin, D, H, W), jnp.float32)
    w1 = 0.1 * jax.random.normal(k1, (Cout, Cin, 3, 3, 3), jnp.float32)
    w2 = 0.1 * jax.random.normal(k2, (Cout, Cin, 3, 3, 3), jnp.float32)
    w3 = 0.1 * jax.random.normal(k3, (Cout, Cin, 3, 3, 3), jnp.float32)
    b1 = 0.1 * jax.random.normal(kb1, (Cout,), jnp.float32)
    b2 = 0.1 * jax.random.normal(kb2, (Cout,), jnp.float32)
    b3 = 0.1 * jax.random.normal(kb3, (Cout,), jnp.float32)

    out = jax.jit(net_forward)(x, [w1, w2, w3], [b1, b2, b3])
    out = jax.block_until_ready(out)
    assert out.shape == (N, 3 * Cout, D, H, W)

    w_cat = jnp.concatenate([w1, w2, w3], axis=0)
    b_cat = jnp.concatenate([b1, b2, b3], axis=0)
    dn = ("NCDHW", "OIDHW", "NCDHW")
    pad3 = ((1, 1), (1, 1), (1, 1))

    # Check 1 -- kernel correctness: same bf16 operand quantization, f32 math.
    xq = x.astype(jnp.bfloat16).astype(jnp.float32)
    wq = w_cat.astype(jnp.bfloat16).astype(jnp.float32)
    ref_q = lax.conv_general_dilated(
        xq, wq, (1, 1, 1), pad3, dimension_numbers=dn,
        precision=lax.Precision.HIGHEST) + b_cat.reshape(1, -1, 1, 1, 1)
    assert jnp.allclose(out, ref_q, atol=2e-3, rtol=2e-3), (
        "max abs err vs bf16-quantized ref: "
        f"{float(jnp.max(jnp.abs(out - ref_q)))}")

    # Check 2 -- module semantics (full f32 reference); looser tolerance covers
    # the deliberate bf16 operand quantization inside the kernel.
    ref_f32 = lax.conv_general_dilated(
        x, w_cat, (1, 1, 1), pad3, dimension_numbers=dn,
        precision=lax.Precision.HIGHEST) + b_cat.reshape(1, -1, 1, 1, 1)
    assert jnp.allclose(out, ref_f32, atol=1e-1, rtol=1e-1)

    print("KERNEL_OK")
</pallas_src>

<mosaic_0001>
module attributes {stable_mosaic.version = 11 : i64} {
  func.func @conv3d_kernel(%arg0: i32, %arg1: memref<1x4x512xbf16, #tpu.memory_space<vmem>>, %arg2: memref<9x512xbf16, #tpu.memory_space<vmem>>, %arg3: memref<12x108xbf16, #tpu.memory_space<vmem>>, %arg4: memref<12x1xf32, #tpu.memory_space<vmem>>, %arg5: memref<1x12x512xf32, #tpu.memory_space<vmem>>, %arg6: memref<4x768xbf16, #tpu.memory_space<vmem>>, %arg7: memref<108x512xbf16, #tpu.memory_space<vmem>>) attributes {dimension_semantics = [#tpu.dimension_semantics<parallel>], iteration_bounds = array<i64: 2>, scalar_prefetch = 0 : i64, scratch_operands = 2 : i64, tpu.core_type = #tpu.core_type<tc>, window_params = [{transform_indices = @transform_0, window_bounds = array<i64: 1, 4, 512>}, {pipeline_mode = #tpu.pipeline_mode<synchronous>, transform_indices = @transform_1, window_bounds = array<i64: 9, 512>}, {pipeline_mode = #tpu.pipeline_mode<synchronous>, transform_indices = @transform_2, window_bounds = array<i64: 12, 108>}, {pipeline_mode = #tpu.pipeline_mode<synchronous>, transform_indices = @transform_3, window_bounds = array<i64: 12, 1>}, {transform_indices = @transform_4, window_bounds = array<i64: 1, 12, 512>}]} {
    %cst = arith.constant 0.000000e+00 : bf16
    %0 = vector.broadcast %cst : bf16 to vector<4x128xbf16>
    %c0 = arith.constant 0 : index
    %c0_0 = arith.constant 0 : index
    %1 = vector.load %arg6[%c0, %c0_0] : memref<4x768xbf16, #tpu.memory_space<vmem>>, vector<4x128xbf16>
    tpu.vector_store %arg6[%c0, %c0_0], %0 {strides = array<i32>} : memref<4x768xbf16, #tpu.memory_space<vmem>>, vector<4x128xbf16>,
    %c0_1 = arith.constant 0 : index
    %c640 = arith.constant 640 : index
    %2 = vector.load %arg6[%c0_1, %c640] : memref<4x768xbf16, #tpu.memory_space<vmem>>, vector<4x128xbf16>
    tpu.vector_store %arg6[%c0_1, %c640], %0 {strides = array<i32>} : memref<4x768xbf16, #tpu.memory_space<vmem>>, vector<4x128xbf16>,
    %c0_2 = arith.constant 0 : index
    %c0_3 = arith.constant 0 : index
    %c0_4 = arith.constant 0 : index
    %3 = vector.load %arg1[%c0_2, %c0_3, %c0_4] : memref<1x4x512xbf16, #tpu.memory_space<vmem>>, vector<1x4x512xbf16>
    %4 = vector.shape_cast %3 : vector<1x4x512xbf16> to vector<4x512xbf16>
    %c0_5 = arith.constant 0 : index
    %c128 = arith.constant 128 : index
    %5 = vector.load %arg6[%c0_5, %c128] : memref<4x768xbf16, #tpu.memory_space<vmem>>, vector<4x512xbf16>
    tpu.vector_store %arg6[%c0_5, %c128], %4 {strides = array<i32>} : memref<4x768xbf16, #tpu.memory_space<vmem>>, vector<4x512xbf16>,
    %c0_6 = arith.constant 0 : index
    %c55 = arith.constant 55 : index
    %6 = vector.load %arg6[%c0_6, %c55] : memref<4x768xbf16, #tpu.memory_space<vmem>>, vector<4x512xbf16>
    %c0_7 = arith.constant 0 : index
    %c0_8 = arith.constant 0 : index
    %7 = vector.load %arg2[%c0_7, %c0_8] : memref<9x512xbf16, #tpu.memory_space<vmem>>, vector<1x512xbf16>
    %8 = vector.broadcast %7 : vector<1x512xbf16> to vector<4x512xbf16>
    %9 = arith.mulf %6, %8 : vector<4x512xbf16>
    %c0_9 = arith.constant 0 : index
    %c0_10 = arith.constant 0 : index
    %10 = vector.load %arg7[%c0_9, %c0_10] : memref<108x512xbf16, #tpu.memory_space<vmem>>, vector<4x512xbf16>
    tpu.vector_store %arg7[%c0_9, %c0_10], %9 {strides = array<i32>} : memref<108x512xbf16, #tpu.memory_space<vmem>>, vector<4x512xbf16>,
    %c0_11 = arith.constant 0 : index
    %c56 = arith.constant 56 : index
    %11 = vector.load %arg6[%c0_11, %c56] : memref<4x768xbf16, #tpu.memory_space<vmem>>, vector<4x512xbf16>
    %c1 = arith.constant 1 : index
    %c0_12 = arith.constant 0 : index
    %12 = vector.load %arg2[%c1, %c0_12] : memref<9x512xbf16, #tpu.memory_space<vmem>>, vector<1x512xbf16>
    %13 = vector.broadcast %12 : vector<1x512xbf16> to vector<4x512xbf16>
    %14 = arith.mulf %11, %13 : vector<4x512xbf16>
    %c4 = arith.constant 4 : index
    %c0_13 = arith.constant 0 : index
    %15 = vector.load %arg7[%c4, %c0_13] : memref<108x512xbf16, #tpu.memory_space<vmem>>, vector<4x512xbf16>
    tpu.vector_store %arg7[%c4, %c0_13], %14 {strides = array<i32>} : memref<108x512xbf16, #tpu.memory_space<vmem>>, vector<4x512xbf16>,
    %c0_14 = arith.constant 0 : index
    %c57 = arith.constant 57 : index
    %16 = vector.load %arg6[%c0_14, %c57] : memref<4x768xbf16, #tpu.memory_space<vmem>>, vector<4x512xbf16>
    %c2 = arith.constant 2 : index
    %c0_15 = arith.constant 0 : index
    %17 = vector.load %arg2[%c2, %c0_15] : memref<9x512xbf16, #tpu.memory_space<vmem>>, vector<1x512xbf16>
    %18 = vector.broadcast %17 : vector<1x512xbf16> to vector<4x512xbf16>
    %19 = arith.mulf %16, %18 : vector<4x512xbf16>
    %c8 = arith.constant 8 : index
    %c0_16 = arith.constant 0 : index
    %20 = vector.load %arg7[%c8, %c0_16] : memref<108x512xbf16, #tpu.memory_space<vmem>>, vector<4x512xbf16>
    tpu.vector_store %arg7[%c8, %c0_16], %19 {strides = array<i32>} : memref<108x512xbf16, #tpu.memory_space<vmem>>, vector<4x512xbf16>,
    %c0_17 = arith.constant 0 : index
    %c63 = arith.constant 63 : index
    %21 = vector.load %arg6[%c0_17, %c63] : memref<4x768xbf16, #tpu.memory_space<vmem>>, vector<4x512xbf16>
    %c3 = arith.constant 3 : index
    %c0_18 = arith.constant 0 : index
    %22 = vector.load %arg2[%c3, %c0_18] : memref<9x512xbf16, #tpu.memory_space<vmem>>, vector<1x512xbf16>
    %23 = vector.broadcast %22 : vector<1x512xbf16> to vector<4x512xbf16>
    %24 = arith.mulf %21, %23 : vector<4x512xbf16>
    %c12 = arith.constant 12 : index
    %c0_19 = arith.constant 0 : index
    %25 = vector.load %arg7[%c12, %c0_19] : memref<108x512xbf16, #tpu.memory_space<vmem>>, vector<4x512xbf16>
    tpu.vector_store %arg7[%c12, %c0_19], %24 {strides = array<i32>} : memref<108x512xbf16, #tpu.memory_space<vmem>>, vector<4x512xbf16>,
    %c0_20 = arith.constant 0 : index
    %c64 = arith.constant 64 : index
    %26 = vector.load %arg6[%c0_20, %c64] : memref<4x768xbf16, #tpu.memory_space<vmem>>, vector<4x512xbf16>
    %c16 = arith.constant 16 : index
    %c0_21 = arith.constant 0 : index
    %27 = vector.load %arg7[%c16, %c0_21] : memref<108x512xbf16, #tpu.memory_space<vmem>>, vector<4x512xbf16>
    tpu.vector_store %arg7[%c16, %c0_21], %26 {strides = array<i32>} : memref<108x512xbf16, #tpu.memory_space<vmem>>, vector<4x512xbf16>,
    %c0_22 = arith.constant 0 : index
    %c65 = arith.constant 65 : index
    %28 = vector.load %arg6[%c0_22, %c65] : memref<4x768xbf16, #tpu.memory_space<vmem>>, vector<4x512xbf16>
    %c5 = arith.constant 5 : index
    %c0_23 = arith.constant 0 : index
    %29 = vector.load %arg2[%c5, %c0_23] : memref<9x512xbf16, #tpu.memory_space<vmem>>, vector<1x512xbf16>
    %30 = vector.broadcast %29 : vector<1x512xbf16> to vector<4x512xbf16>
    %31 = arith.mulf %28, %30 : vector<4x512xbf16>
    %c20 = arith.constant 20 : index
    %c0_24 = arith.constant 0 : index
    %32 = vector.load %arg7[%c20, %c0_24] : memref<108x512xbf16, #tpu.memory_space<vmem>>, vector<4x512xbf16>
    tpu.vector_store %arg7[%c20, %c0_24], %31 {strides = array<i32>} : memref<108x512xbf16, #tpu.memory_space<vmem>>, vector<4x512xbf16>,
    %c0_25 = arith.constant 0 : index
    %c71 = arith.constant 71 : index
    %33 = vector.load %arg6[%c0_25, %c71] : memref<4x768xbf16, #tpu.memory_space<vmem>>, vector<4x512xbf16>
    %c6 = arith.constant 6 : index
    %c0_26 = arith.constant 0 : index
    %34 = vector.load %arg2[%c6, %c0_26] : memref<9x512xbf16, #tpu.memory_space<vmem>>, vector<1x512xbf16>
    %35 = vector.broadcast %34 : vector<1x512xbf16> to vector<4x512xbf16>
    %36 = arith.mulf %33, %35 : vector<4x512xbf16>
    %c24 = arith.constant 24 : index
    %c0_27 = arith.constant 0 : index
    %37 = vector.load %arg7[%c24, %c0_27] : memref<108x512xbf16, #tpu.memory_space<vmem>>, vector<4x512xbf16>
    tpu.vector_store %arg7[%c24, %c0_27], %36 {strides = array<i32>} : memref<108x512xbf16, #tpu.memory_space<vmem>>, vector<4x512xbf16>,
    %c0_28 = arith.constant 0 : index
    %c72 = arith.constant 72 : index
    %38 = vector.load %arg6[%c0_28, %c72] : memref<4x768xbf16, #tpu.memory_space<vmem>>, vector<4x512xbf16>
    %c7 = arith.constant 7 : index
    %c0_29 = arith.constant 0 : index
    %39 = vector.load %arg2[%c7, %c0_29] : memref<9x512xbf16, #tpu.memory_space<vmem>>, vector<1x512xbf16>
    %40 = vector.broadcast %39 : vector<1x512xbf16> to vector<4x512xbf16>
    %41 = arith.mulf %38, %40 : vector<4x512xbf16>
    %c28 = arith.constant 28 : index
    %c0_30 = arith.constant 0 : index
    %42 = vector.load %arg7[%c28, %c0_30] : memref<108x512xbf16, #tpu.memory_space<vmem>>, vector<4x512xbf16>
    tpu.vector_store %arg7[%c28, %c0_30], %41 {strides = array<i32>} : memref<108x512xbf16, #tpu.memory_space<vmem>>, vector<4x512xbf16>,
    %c0_31 = arith.constant 0 : index
    %c73 = arith.constant 73 : index
    %43 = vector.load %arg6[%c0_31, %c73] : memref<4x768xbf16, #tpu.memory_space<vmem>>, vector<4x512xbf16>
    %c8_32 = arith.constant 8 : index
    %c0_33 = arith.constant 0 : index
    %44 = vector.load %arg2[%c8_32, %c0_33] : memref<9x512xbf16, #tpu.memory_space<vmem>>, vector<1x512xbf16>
    %45 = vector.broadcast %44 : vector<1x512xbf16> to vector<4x512xbf16>
    %46 = arith.mulf %43, %45 : vector<4x512xbf16>
    %c32 = arith.constant 32 : index
    %c0_34 = arith.constant 0 : index
    %47 = vector.load %arg7[%c32, %c0_34] : memref<108x512xbf16, #tpu.memory_space<vmem>>, vector<4x512xbf16>
    tpu.vector_store %arg7[%c32, %c0_34], %46 {strides = array<i32>} : memref<108x512xbf16, #tpu.memory_space<vmem>>, vector<4x512xbf16>,
    %c0_35 = arith.constant 0 : index
    %c119 = arith.constant 119 : index
    %48 = vector.load %arg6[%c0_35, %c119] : memref<4x768xbf16, #tpu.memory_space<vmem>>, vector<4x512xbf16>
    %c0_36 = arith.constant 0 : index
    %c0_37 = arith.constant 0 : index
    %49 = vector.load %arg2[%c0_36, %c0_37] : memref<9x512xbf16, #tpu.memory_space<vmem>>, vector<1x512xbf16>
    %50 = vector.broadcast %49 : vector<1x512xbf16> to vector<4x512xbf16>
    %51 = arith.mulf %48, %50 : vector<4x512xbf16>
    %c36 = arith.constant 36 : index
    %c0_38 = arith.constant 0 : index
    %52 = vector.load %arg7[%c36, %c0_38] : memref<108x512xbf16, #tpu.memory_space<vmem>>, vector<4x512xbf16>
    tpu.vector_store %arg7[%c36, %c0_38], %51 {strides = array<i32>} : memref<108x512xbf16, #tpu.memory_space<vmem>>, vector<4x512xbf16>,
    %c0_39 = arith.constant 0 : index
    %c120 = arith.constant 120 : index
    %53 = vector.load %arg6[%c0_39, %c120] : memref<4x768xbf16, #tpu.memory_space<vmem>>, vector<4x512xbf16>
    %c1_40 = arith.constant 1 : index
    %c0_41 = arith.constant 0 : index
    %54 = vector.load %arg2[%c1_40, %c0_41] : memref<9x512xbf16, #tpu.memory_space<vmem>>, vector<1x512xbf16>
    %55 = vector.broadcast %54 : vector<1x512xbf16> to vector<4x512xbf16>
    %56 = arith.mulf %53, %55 : vector<4x512xbf16>
    %c40 = arith.constant 40 : index
    %c0_42 = arith.constant 0 : index
    %57 = vector.load %arg7[%c40, %c0_42] : memref<108x512xbf16, #tpu.memory_space<vmem>>, vector<4x512xbf16>
    tpu.vector_store %arg7[%c40, %c0_42], %56 {strides = array<i32>} : memref<108x512xbf16, #tpu.memory_space<vmem>>, vector<4x512xbf16>,
    %c0_43 = arith.constant 0 : index
    %c121 = arith.constant 121 : index
    %58 = vector.load %arg6[%c0_43, %c121] : memref<4x768xbf16, #tpu.memory_space<vmem>>, vector<4x512xbf16>
    %c2_44 = arith.constant 2 : index
    %c0_45 = arith.constant 0 : index
    %59 = vector.load %arg2[%c2_44, %c0_45] : memref<9x512xbf16, #tpu.memory_space<vmem>>, vector<1x512xbf16>
    %60 = vector.broadcast %59 : vector<1x512xbf16> to vector<4x512xbf16>
    %61 = arith.mulf %58, %60 : vector<4x512xbf16>
    %c44 = arith.constant 44 : index
    %c0_46 = arith.constant 0 : index
    %62 = vector.load %arg7[%c44, %c0_46] : memref<108x512xbf16, #tpu.memory_space<vmem>>, vector<4x512xbf16>
    tpu.vector_store %arg7[%c44, %c0_46], %61 {strides = array<i32>} : memref<108x512xbf16, #tpu.memory_space<vmem>>, vector<4x512xbf16>,
    %c0_47 = arith.constant 0 : index
    %c127 = arith.constant 127 : index
    %63 = vector.load %arg6[%c0_47, %c127] : memref<4x768xbf16, #tpu.memory_space<vmem>>, vector<4x512xbf16>
    %c3_48 = arith.constant 3 : index
    %c0_49 = arith.constant 0 : index
    %64 = vector.load %arg2[%c3_48, %c0_49] : memref<9x512xbf16, #tpu.memory_space<vmem>>, vector<1x512xbf16>
    %65 = vector.broadcast %64 : vector<1x512xbf16> to vector<4x512xbf16>
    %66 = arith.mulf %63, %65 : vector<4x512xbf16>
    %c48 = arith.constant 48 : index
    %c0_50 = arith.constant 0 : index
    %67 = vector.load %arg7[%c48, %c0_50] : memref<108x512xbf16, #tpu.memory_space<vmem>>, vector<4x512xbf16>
    tpu.vector_store %arg7[%c48, %c0_50], %66 {strides = array<i32>} : memref<108x512xbf16, #tpu.memory_space<vmem>>, vector<4x512xbf16>,
    %c0_51 = arith.constant 0 : index
    %c128_52 = arith.constant 128 : index
    %68 = vector.load %arg6[%c0_51, %c128_52] : memref<4x768xbf16, #tpu.memory_space<vmem>>, vector<4x512xbf16>
    %c52 = arith.constant 52 : index
    %c0_53 = arith.constant 0 : index
    %69 = vector.load %arg7[%c52, %c0_53] : memref<108x512xbf16, #tpu.memory_space<vmem>>, vector<4x512xbf16>
    tpu.vector_store %arg7[%c52, %c0_53], %68 {strides = array<i32>} : memref<108x512xbf16, #tpu.memory_space<vmem>>, vector<4x512xbf16>,
    %c0_54 = arith.constant 0 : index
    %c129 = arith.constant 129 : index
    %70 = vector.load %arg6[%c0_54, %c129] : memref<4x768xbf16, #tpu.memory_space<vmem>>, vector<4x512xbf16>
    %c5_55 = arith.constant 5 : index
    %c0_56 = arith.constant 0 : index
    %71 = vector.load %arg2[%c5_55, %c0_56] : memref<9x512xbf16, #tpu.memory_space<vmem>>, vector<1x512xbf16>
    %72 = vector.broadcast %71 : vector<1x512xbf16> to vector<4x512xbf16>
    %73 = arith.mulf %70, %72 : vector<4x512xbf16>
    %c56_57 = arith.constant 56 : index
    %c0_58 = arith.constant 0 : index
    %74 = vector.load %arg7[%c56_57, %c0_58] : memref<108x512xbf16, #tpu.memory_space<vmem>>, vector<4x512xbf16>
    tpu.vector_store %arg7[%c56_57, %c0_58], %73 {strides = array<i32>} : memref<108x512xbf16, #tpu.memory_space<vmem>>, vector<4x512xbf16>,
    %c0_59 = arith.constant 0 : index
    %c135 = arith.constant 135 : index
    %75 = vector.load %arg6[%c0_59, %c135] : memref<4x768xbf16, #tpu.memory_space<vmem>>, vector<4x512xbf16>
    %c6_60 = arith.constant 6 : index
    %c0_61 = arith.constant 0 : index
    %76 = vector.load %arg2[%c6_60, %c0_61] : memref<9x512xbf16, #tpu.memory_space<vmem>>, vector<1x512xbf16>
    %77 = vector.broadcast %76 : vector<1x512xbf16> to vector<4x512xbf16>
    %78 = arith.mulf %75, %77 : vector<4x512xbf16>
    %c60 = arith.constant 60 : index
    %c0_62 = arith.constant 0 : index
    %79 = vector.load %arg7[%c60, %c0_62] : memref<108x512xbf16, #tpu.memory_space<vmem>>, vector<4x512xbf16>
    tpu.vector_store %arg7[%c60, %c0_62], %78 {strides = array<i32>} : memref<108x512xbf16, #tpu.memory_space<vmem>>, vector<4x512xbf16>,
    %c0_63 = arith.constant 0 : index
    %c136 = arith.constant 136 : index
    %80 = vector.load %arg6[%c0_63, %c136] : memref<4x768xbf16, #tpu.memory_space<vmem>>, vector<4x512xbf16>
    %c7_64 = arith.constant 7 : index
    %c0_65 = arith.constant 0 : index
    %81 = vector.load %arg2[%c7_64, %c0_65] : memref<9x512xbf16, #tpu.memory_space<vmem>>, vector<1x512xbf16>
    %82 = vector.broadcast %81 : vector<1x512xbf16> to vector<4x512xbf16>
    %83 = arith.mulf %80, %82 : vector<4x512xbf16>
    %c64_66 = arith.constant 64 : index
    %c0_67 = arith.constant 0 : index
    %84 = vector.load %arg7[%c64_66, %c0_67] : memref<108x512xbf16, #tpu.memory_space<vmem>>, vector<4x512xbf16>
    tpu.vector_store %arg7[%c64_66, %c0_67], %83 {strides = array<i32>} : memref<108x512xbf16, #tpu.memory_space<vmem>>, vector<4x512xbf16>,
    %c0_68 = arith.constant 0 : index
    %c137 = arith.constant 137 : index
    %85 = vector.load %arg6[%c0_68, %c137] : memref<4x768xbf16, #tpu.memory_space<vmem>>, vector<4x512xbf16>
    %c8_69 = arith.constant 8 : index
    %c0_70 = arith.constant 0 : index
    %86 = vector.load %arg2[%c8_69, %c0_70] : memref<9x512xbf16, #tpu.memory_space<vmem>>, vector<1x512xbf16>
    %87 = vector.broadcast %86 : vector<1x512xbf16> to vector<4x512xbf16>
    %88 = arith.mulf %85, %87 : vector<4x512xbf16>
    %c68 = arith.constant 68 : index
    %c0_71 = arith.constant 0 : index
    %89 = vector.load %arg7[%c68, %c0_71] : memref<108x512xbf16, #tpu.memory_space<vmem>>, vector<4x512xbf16>
    tpu.vector_store %arg7[%c68, %c0_71], %88 {strides = array<i32>} : memref<108x512xbf16, #tpu.memory_space<vmem>>, vector<4x512xbf16>,
    %c0_72 = arith.constant 0 : index
    %c183 = arith.constant 183 : index
    %90 = vector.load %arg6[%c0_72, %c183] : memref<4x768xbf16, #tpu.memory_space<vmem>>, vector<4x512xbf16>
    %c0_73 = arith.constant 0 : index
    %c0_74 = arith.constant 0 : index
    %91 = vector.load %arg2[%c0_73, %c0_74] : memref<9x512xbf16, #tpu.memory_space<vmem>>, vector<1x512xbf16>
    %92 = vector.broadcast %91 : vector<1x512xbf16> to vector<4x512xbf16>
    %93 = arith.mulf %90, %92 : vector<4x512xbf16>
    %c72_75 = arith.constant 72 : index
    %c0_76 = arith.constant 0 : index
    %94 = vector.load %arg7[%c72_75, %c0_76] : memref<108x512xbf16, #tpu.memory_space<vmem>>, vector<4x512xbf16>
    tpu.vector_store %arg7[%c72_75, %c0_76], %93 {strides = array<i32>} : memref<108x512xbf16, #tpu.memory_space<vmem>>, vector<4x512xbf16>,
    %c0_77 = arith.constant 0 : index
    %c184 = arith.constant 184 : index
    %95 = vector.load %arg6[%c0_77, %c184] : memref<4x768xbf16, #tpu.memory_space<vmem>>, vector<4x512xbf16>
    %c1_78 = arith.constant 1 : index
    %c0_79 = arith.constant 0 : index
    %96 = vector.load %arg2[%c1_78, %c0_79] : memref<9x512xbf16, #tpu.memory_space<vmem>>, vector<1x512xbf16>
    %97 = vector.broadcast %96 : vector<1x512xbf16> to vector<4x512xbf16>
    %98 = arith.mulf %95, %97 : vector<4x512xbf16>
    %c76 = arith.constant 76 : index
    %c0_80 = arith.constant 0 : index
    %99 = vector.load %arg7[%c76, %c0_80] : memref<108x512xbf16, #tpu.memory_space<vmem>>, vector<4x512xbf16>
    tpu.vector_store %arg7[%c76, %c0_80], %98 {strides = array<i32>} : memref<108x512xbf16, #tpu.memory_space<vmem>>, vector<4x512xbf16>,
    %c0_81 = arith.constant 0 : index
    %c185 = arith.constant 185 : index
    %100 = vector.load %arg6[%c0_81, %c185] : memref<4x768xbf16, #tpu.memory_space<vmem>>, vector<4x512xbf16>
    %c2_82 = arith.constant 2 : index
    %c0_83 = arith.constant 0 : index
    %101 = vector.load %arg2[%c2_82, %c0_83] : memref<9x512xbf16, #tpu.memory_space<vmem>>, vector<1x512xbf16>
    %102 = vector.broadcast %101 : vector<1x512xbf16> to vector<4x512xbf16>
    %103 = arith.mulf %100, %102 : vector<4x512xbf16>
    %c80 = arith.constant 80 : index
    %c0_84 = arith.constant 0 : index
    %104 = vector.load %arg7[%c80, %c0_84] : memref<108x512xbf16, #tpu.memory_space<vmem>>, vector<4x512xbf16>
    tpu.vector_store %arg7[%c80, %c0_84], %103 {strides = array<i32>} : memref<108x512xbf16, #tpu.memory_space<vmem>>, vector<4x512xbf16>,
    %c0_85 = arith.constant 0 : index
    %c191 = arith.constant 191 : index
    %105 = vector.load %arg6[%c0_85, %c191] : memref<4x768xbf16, #tpu.memory_space<vmem>>, vector<4x512xbf16>
    %c3_86 = arith.constant 3 : index
    %c0_87 = arith.constant 0 : index
    %106 = vector.load %arg2[%c3_86, %c0_87] : memref<9x512xbf16, #tpu.memory_space<vmem>>, vector<1x512xbf16>
    %107 = vector.broadcast %106 : vector<1x512xbf16> to vector<4x512xbf16>
    %108 = arith.mulf %105, %107 : vector<4x512xbf16>
    %c84 = arith.constant 84 : index
    %c0_88 = arith.constant 0 : index
    %109 = vector.load %arg7[%c84, %c0_88] : memref<108x512xbf16, #tpu.memory_space<vmem>>, vector<4x512xbf16>
    tpu.vector_store %arg7[%c84, %c0_88], %108 {strides = array<i32>} : memref<108x512xbf16, #tpu.memory_space<vmem>>, vector<4x512xbf16>,
    %c0_89 = arith.constant 0 : index
    %c192 = arith.constant 192 : index
    %110 = vector.load %arg6[%c0_89, %c192] : memref<4x768xbf16, #tpu.memory_space<vmem>>, vector<4x512xbf16>
    %c88 = arith.constant 88 : index
    %c0_90 = arith.constant 0 : index
    %111 = vector.load %arg7[%c88, %c0_90] : memref<108x512xbf16, #tpu.memory_space<vmem>>, vector<4x512xbf16>
    tpu.vector_store %arg7[%c88, %c0_90], %110 {strides = array<i32>} : memref<108x512xbf16, #tpu.memory_space<vmem>>, vector<4x512xbf16>,
    %c0_91 = arith.constant 0 : index
    %c193 = arith.constant 193 : index
    %112 = vector.load %arg6[%c0_91, %c193] : memref<4x768xbf16, #tpu.memory_space<vmem>>, vector<4x512xbf16>
    %c5_92 = arith.constant 5 : index
    %c0_93 = arith.constant 0 : index
    %113 = vector.load %arg2[%c5_92, %c0_93] : memref<9x512xbf16, #tpu.memory_space<vmem>>, vector<1x512xbf16>
    %114 = vector.broadcast %113 : vector<1x512xbf16> to vector<4x512xbf16>
    %115 = arith.mulf %112, %114 : vector<4x512xbf16>
    %c92 = arith.constant 92 : index
    %c0_94 = arith.constant 0 : index
    %116 = vector.load %arg7[%c92, %c0_94] : memref<108x512xbf16, #tpu.memory_space<vmem>>, vector<4x512xbf16>
    tpu.vector_store %arg7[%c92, %c0_94], %115 {strides = array<i32>} : memref<108x512xbf16, #tpu.memory_space<vmem>>, vector<4x512xbf16>,
    %c0_95 = arith.constant 0 : index
    %c199 = arith.constant 199 : index
    %117 = vector.load %arg6[%c0_95, %c199] : memref<4x768xbf16, #tpu.memory_space<vmem>>, vector<4x512xbf16>
    %c6_96 = arith.constant 6 : index
    %c0_97 = arith.constant 0 : index
    %118 = vector.load %arg2[%c6_96, %c0_97] : memref<9x512xbf16, #tpu.memory_space<vmem>>, vector<1x512xbf16>
    %119 = vector.broadcast %118 : vector<1x512xbf16> to vector<4x512xbf16>
    %120 = arith.mulf %117, %119 : vector<4x512xbf16>
    %c96 = arith.constant 96 : index
    %c0_98 = arith.constant 0 : index
    %121 = vector.load %arg7[%c96, %c0_98] : memref<108x512xbf16, #tpu.memory_space<vmem>>, vector<4x512xbf16>
    tpu.vector_store %arg7[%c96, %c0_98], %120 {strides = array<i32>} : memref<108x512xbf16, #tpu.memory_space<vmem>>, vector<4x512xbf16>,
    %c0_99 = arith.constant 0 : index
    %c200 = arith.constant 200 : index
    %122 = vector.load %arg6[%c0_99, %c200] : memref<4x768xbf16, #tpu.memory_space<vmem>>, vector<4x512xbf16>
    %c7_100 = arith.constant 7 : index
    %c0_101 = arith.constant 0 : index
    %123 = vector.load %arg2[%c7_100, %c0_101] : memref<9x512xbf16, #tpu.memory_space<vmem>>, vector<1x512xbf16>
    %124 = vector.broadcast %123 : vector<1x512xbf16> to vector<4x512xbf16>
    %125 = arith.mulf %122, %124 : vector<4x512xbf16>
    %c100 = arith.constant 100 : index
    %c0_102 = arith.constant 0 : index
    %126 = vector.load %arg7[%c100, %c0_102] : memref<108x512xbf16, #tpu.memory_space<vmem>>, vector<4x512xbf16>
    tpu.vector_store %arg7[%c100, %c0_102], %125 {strides = array<i32>} : memref<108x512xbf16, #tpu.memory_space<vmem>>, vector<4x512xbf16>,
    %c0_103 = arith.constant 0 : index
    %c201 = arith.constant 201 : index
    %127 = vector.load %arg6[%c0_103, %c201] : memref<4x768xbf16, #tpu.memory_space<vmem>>, vector<4x512xbf16>
    %c8_104 = arith.constant 8 : index
    %c0_105 = arith.constant 0 : index
    %128 = vector.load %arg2[%c8_104, %c0_105] : memref<9x512xbf16, #tpu.memory_space<vmem>>, vector<1x512xbf16>
    %129 = vector.broadcast %128 : vector<1x512xbf16> to vector<4x512xbf16>
    %130 = arith.mulf %127, %129 : vector<4x512xbf16>
    %c104 = arith.constant 104 : index
    %c0_106 = arith.constant 0 : index
    %131 = vector.load %arg7[%c104, %c0_106] : memref<108x512xbf16, #tpu.memory_space<vmem>>, vector<4x512xbf16>
    tpu.vector_store %arg7[%c104, %c0_106], %130 {strides = array<i32>} : memref<108x512xbf16, #tpu.memory_space<vmem>>, vector<4x512xbf16>,
    %c0_107 = arith.constant 0 : index
    %c0_108 = arith.constant 0 : index
    %132 = vector.load %arg3[%c0_107, %c0_108] : memref<12x108xbf16, #tpu.memory_space<vmem>>, vector<12x108xbf16>
    %c0_109 = arith.constant 0 : index
    %c0_110 = arith.constant 0 : index
    %133 = vector.load %arg7[%c0_109, %c0_110] : memref<108x512xbf16, #tpu.memory_space<vmem>>, vector<108x512xbf16>
    %cst_111 = arith.constant dense<0.000000e+00> : vector<12x512xf32>
    %134 = tpu.matmul %132, %133, %cst_111 {dimension_numbers = #tpu.dot_dimension_numbers<[1], [0], [0], [1], [0, 0, 1, 1], [], []>} : vector<12x108xbf16>, vector<108x512xbf16>, vector<12x512xf32> -> vector<12x512xf32>
    %c0_112 = arith.constant 0 : index
    %c0_113 = arith.constant 0 : index
    %135 = vector.load %arg4[%c0_112, %c0_113] : memref<12x1xf32, #tpu.memory_space<vmem>>, vector<12x1xf32>
    %136 = vector.broadcast %135 : vector<12x1xf32> to vector<12x512xf32>
    %137 = arith.addf %134, %136 : vector<12x512xf32>
    %c0_114 = arith.constant 0 : index
    %c0_115 = arith.constant 0 : index
    %c0_116 = arith.constant 0 : index
    %138 = vector.load %arg5[%c0_114, %c0_115, %c0_116] : memref<1x12x512xf32, #tpu.memory_space<vmem>>, vector<1x12x512xf32>
    %139 = vector.shape_cast %138 : vector<1x12x512xf32> to vector<12x512xf32>
    %140 = vector.shape_cast %137 : vector<12x512xf32> to vector<1x12x512xf32>
    tpu.vector_store %arg5[%c0_114, %c0_115, %c0_116], %140 {strides = array<i32>} : memref<1x12x512xf32, #tpu.memory_space<vmem>>, vector<1x12x512xf32>,
    return
  }
  func.func @transform_0(%arg0: i32) -> (i32, i32, i32) {
    %c0_i32 = arith.constant 0 : i32
    %c0_i32_0 = arith.constant 0 : i32
    %c0_i32_1 = arith.constant 0 : i32
    return %arg0, %c0_i32, %c0_i32_0 : i32, i32, i32
  }
  func.func @transform_1(%arg0: i32) -> (i32, i32) {
    %c0_i32 = arith.constant 0 : i32
    %c0_i32_0 = arith.constant 0 : i32
    %c0_i32_1 = arith.constant 0 : i32
    return %c0_i32, %c0_i32_0 : i32, i32
  }
  func.func @transform_2(%arg0: i32) -> (i32, i32) {
    %c0_i32 = arith.constant 0 : i32
    %c0_i32_0 = arith.constant 0 : i32
    %c0_i32_1 = arith.constant 0 : i32
    return %c0_i32, %c0_i32_0 : i32, i32
  }
  func.func @transform_3(%arg0: i32) -> (i32, i32) {
    %c0_i32 = arith.constant 0 : i32
    %c0_i32_0 = arith.constant 0 : i32
    %c0_i32_1 = arith.constant 0 : i32
    return %c0_i32, %c0_i32_0 : i32, i32
  }
  func.func @transform_4(%arg0: i32) -> (i32, i32, i32) {
    %c0_i32 = arith.constant 0 : i32
    %c0_i32_0 = arith.constant 0 : i32
    %c0_i32_1 = arith.constant 0 : i32
    return %arg0, %c0_i32, %c0_i32_0 : i32, i32, i32
  }
}

</mosaic_0001>

<bundles_post_ra>
// kernel: net_forward.1
= control target key start
LH: loop header
LB: loop body
LE: loop exit
PB: predicated region body
PF: predicated region fallthrough
CT: control target
= control target key end

     0   :  { %s3794_s15 = smov 0   ;;  %s4760_s0 = inlined_call_operand.vmem [shape: bf16[2,4,512], index: 0, kind: input, shape index: {}]   ;;  %s4761_s1 = inlined_call_operand.vmem [shape: bf16[9,512], index: 1, kind: input, shape index: {}]   ;;  %s4762_s2 = inlined_call_operand.vmem [shape: bf16[12,108], index: 2, kind: input, shape index: {}]   ;;  %s4763_s3 = inlined_call_operand.vmem [shape: f32[12,1], index: 3, kind: input, shape index: {}]   ;;  %s4764_s4 = inlined_call_operand.vmem [shape: f32[2,12,512], index: 4, kind: output, shape index: {}]  }
   0x1 LB: > { %s3425_s16 = sadd.s32 4294967295, %s3748_s15   ;;  %p3429_p0 = scmp.ge.s32.totalorder %s3748_s15, 1  ;;  %s3748_s15 = sphi %s3794_s15, %s14_s15  }
   0x2   : > { %p162_p1 = scmp.lt.s32.totalorder %s3748_s15, 3 }
   0x4   : > { %p163_p2 = pnand %p3429_p0, %p162_p1 }
   0x5   : > { %s3751_s7 = smov (!%p163_p2), 71   ;;  %s3752_s12 = smov (!%p163_p2), 73  }
   0x6   : > { %166 = sbr.rel (%p163_p2) target bundleno = 672 (0x2a0), region = 36  ;;  %p188_p3 = scmp.lt.s32.totalorder (!%p163_p2), %s3425_s16, 1 }
   0x7   : > { %s3753_s19 = smov (!%p163_p2), 72   ;;  %s3754_s28 = smov (!%p163_p2), 57  }
   0x8   : > { %s3755_s8 = smov (!%p163_p2), 63   ;;  %s3756_s14 = smov (!%p163_p2), 9  }
   0x9   : > { %s3758_s30 = smov (!%p163_p2), 65   ;;  %s3759_s9 = smov (!%p163_p2), 55  }
   0xa   : > { %s3760_s21 = smov (!%p163_p2), 56   ;;  %s3762_s20 = smov (!%p163_p2), 127  }
   0xb   : > { %v220_v0 = vlaneseq  ;;  %v2737_v1 = vld [vmem:[%s4761_s1] sm:$0x88]  ;;  %v3750_v2 = vmov 1983009808   ;;  %v2738_v4 = vld [vmem:[%s4761_s1 + $0x8] sm:$0x88] }
   0xc   : > { %v252_v3 = vunpack.c.l.s4 %v3750_v2  ;;  %v3522_v5 = vcombine.low %v2737_v1, %v2737_v1  ;;  %v3523_v6 = vcombine.high %v2737_v1, %v2737_v1  ;;  %v2966_v7 = vld [vmem:[%s4761_s1 + $0x10] sm:$0x11]  ;;  %v3524_v9 = vcombine.low %v2738_v4, %v2738_v4  ;;  %v2967_v11 = vld [vmem:[%s4761_s1 + $0x18] sm:$0x11]  ;;  %v2849_v25 = vld [vmem:[%s4761_s1] sm:$0x88] }
   0xd   : > { %v3811_v8 = vshrl.u32 %v220_v0, 7  ;;  %v3525_v10 = vcombine.high %v2738_v4, %v2738_v4  ;;  %v3530_v12 = vcombine.low %v2966_v7, %v2966_v7  ;;  %v3531_v16 = vcombine.high %v2966_v7, %v2966_v7  ;;  %v2850_v30 = vld [vmem:[%s4761_s1 + $0x8] sm:$0x88]  ;;  %v2348_v51 = vld [vmem:[%s4761_s1] sm:$0x22]  ;;  %s4775_s16 = smov (!%p188_p3, %s3425_s16), 1 }
   0xe   : > { %v253_v13 = vunpack.c.0.s8 %v252_v3  ;;  %v2750_v14 = vpack.i.b16 %v3522_v5, %v3522_v5  ;;  %v2757_v15 = vpack.i.b16 %v3523_v6, %v3523_v6  ;;  %v2764_v18 = vpack.i.b16 %v3524_v9, %v3524_v9  ;;  %v2349_v56 = vld [vmem:[%s4761_s1 + $0x8] sm:$0x22]  ;;  %v2460_v1 = vld [vmem:[%s4761_s1] sm:$0x22]  ;;  %s3569_s22 = sshll.u32 %s4775_s16, 3  ;;  %s3763_s26 = smov 7  }
   0xf   : > { %v3817_v17 = vsub.s32 3, %v3811_v8  ;;  %v2771_v19 = vpack.i.b16 %v3525_v10, %v3525_v10  ;;  %v3820_v20 = vsub.s32 0, %v3811_v8  ;;  %v3532_v22 = vcombine.low %v2967_v11, %v2967_v11  ;;  %s192_s25 = scalar_lea.vmem %s4760_s0, %s3569_s22  ;;  %s3757_s22 = smov 8  }
  0x10   : > { %v3823_v21 = vsub.s32 %v253_v13, %v3811_v8  ;;  %v3533_v23 = vcombine.high %v2967_v11, %v2967_v11  ;;  %v2979_v24 = vpack.i.b16 %v3530_v12, %v3530_v12  ;;  %v2986_v32 = vpack.i.b16 %v3531_v16, %v3531_v16  ;;  %v2461_v11 = vld [vmem:[%s4761_s1 + $0x8] sm:$0x22]  ;;  %s3764_s10 = smov 119   ;;  %s3765_s27 = smov 120  }
  0x11   : > { %v2755_v26 = vrot.slane %v2750_v14, %v3817_v17  ;;  %v2762_v27 = vrot.slane %v2757_v15, %v3817_v17  ;;  %v2769_v28 = vrot.slane %v2764_v18, %v3817_v17  ;;  %v2776_v29 = vrot.slane %v2771_v19, %v3817_v17  ;;  %s3766_s6 = smov 121   ;;  %s3768_s11 = smov 64  }
  0x12   : > { %v2984_v31 = vrot.slane %v2979_v24, %v3820_v20  ;;  %v2993_v33 = vpack.i.b16 %v3532_v22, %v3532_v22  ;;  %v3000_v34 = vpack.i.b16 %v3533_v23, %v3533_v23  ;;  %v3526_v37 = vcombine.low %v2849_v25, %v2849_v25  ;;  %v2006_v23 = vld [vmem:[%s4761_s1 + $0x10] sm:$0x11] }
  0x13   : > { %v2781_v35 = vcombine.low %v2755_v26, %v2762_v27  ;;  %v2782_v36 = vcombine.low %v2769_v28, %v2776_v29  ;;  %v3527_v38 = vcombine.high %v2849_v25, %v2849_v25  ;;  %v2991_v39 = vrot.slane %v2986_v32, %v3820_v20  ;;  %v2007_v32 = vld [vmem:[%s4761_s1 + $0x18] sm:$0x11] }
  0x14   : > { %v2998_v40 = vrot.slane %v2993_v33, %v3820_v20  ;;  %v3005_v41 = vrot.slane %v3000_v34, %v3820_v20  ;;  %v3528_v42 = vcombine.low %v2850_v30, %v2850_v30  ;;  %v3529_v45 = vcombine.high %v2850_v30, %v2850_v30 }
  0x15   : > { %v2789_v43 = vrot.slane %v2781_v35, %v3823_v21  ;;  %v2796_v44 = vrot.slane %v2782_v36, %v3823_v21  ;;  %v2862_v46 = vshrl.u32 %v3526_v37, 16  ;;  %v3010_v47 = vcombine.low %v2984_v31, %v2991_v39 }
  0x16   : > { %v3011_v48 = vcombine.low %v2998_v40, %v3005_v41  ;;  %v2870_v49 = vshrl.u32 %v3527_v38, 16  ;;  %v2878_v50 = vshrl.u32 %v3528_v42, 16  ;;  %v2886_v54 = vshrl.u32 %v3529_v45, 16 }
  0x17   : > { %v2797_v52 = vcombine.low %v2789_v43, %v2796_v44  ;;  %v2863_v53 = vpack.i.b16 %v2862_v46, %v2862_v46  ;;  %v3845_v55 = vsub.s32 1, %v3811_v8  ;;  %v3018_v57 = vrot.slane %v3010_v47, %v3823_v21 }
  0x18   : > { %v3025_v58 = vrot.slane %v3011_v48, %v3823_v21  ;;  %v2871_v59 = vpack.i.b16 %v2870_v49, %v2870_v49  ;;  %v2879_v60 = vpack.i.b16 %v2878_v50, %v2878_v50  ;;  %v2887_v62 = vpack.i.b16 %v2886_v54, %v2886_v54  ;;  %v1890_v49 = vld [vmem:[%s4761_s1] sm:$0x88] }
  0x19   : > { %2798 = vrot.lane.b32.xlu0 %v2797_v52, %s3751_s7  ;;  %v2868_v61 = vrot.slane %v2863_v53, %v3817_v17  ;;  %v3509_v63 = vcombine.low %v2348_v51, %v2348_v51  ;;  %v3510_v0 = vcombine.high %v2348_v51, %v2348_v51  ;;  %v3511_v5 = vcombine.low %v2349_v56, %v2349_v56 }
  0x1a   : > { %v3026_v2 = vcombine.low %v3018_v57, %v3025_v58  ;;  %v2876_v3 = vrot.slane %v2871_v59, %v3817_v17  ;;  %v2884_v4 = vrot.slane %v2879_v60, %v3817_v17  ;;  %v2892_v6 = vrot.slane %v2887_v62, %v3817_v17  ;;  %v1891_v59 = vld [vmem:[%s4761_s1 + $0x8] sm:$0x88]  ;;  %v3899_v60 = vld [vmem:[%s192_s25] sm:$0xff]  ;;  %s3761_s25 = smov 1  }
  0x1b   : > { %v3512_v7 = vcombine.high %v2349_v56, %v2349_v56  ;;  %v2361_v9 = vpack.i.b16 %v3509_v63, %v3509_v63  ;;  %v2368_v10 = vpack.i.b16 %v3510_v0, %v3510_v0  ;;  %v2375_v13 = vpack.i.b16 %v3511_v5, %v3511_v5  ;;  %202 = vst [vmem:[#allocation2 + $0x2] sm:$0xff] %v3899_v60 }
  0x1c   : > { %3027 = vrot.lane.b32.xlu1 %v3026_v2, %s3752_s12  ;;  %v2897_v12 = vcombine.low %v2868_v61, %v2876_v3  ;;  %v3513_v14 = vcombine.low %v2460_v1, %v2460_v1  ;;  %v3514_v15 = vcombine.high %v2460_v1, %v2460_v1  ;;  %v2898_v16 = vcombine.low %v2884_v4, %v2892_v6 }
  0x1d   : > { %v2366_v18 = vrot.slane %v2361_v9, %v3845_v55  ;;  %v2373_v19 = vrot.slane %v2368_v10, %v3845_v55  ;;  %v2382_v22 = vpack.i.b16 %v3512_v7, %v3512_v7  ;;  %v2380_v25 = vrot.slane %v2375_v13, %v3845_v55 }
  0x1e   : > { %v2905_v24 = vrot.slane %v2897_v12, %v3823_v21  ;;  %v3515_v26 = vcombine.low %v2461_v11, %v2461_v11  ;;  %v3516_v27 = vcombine.high %v2461_v11, %v2461_v11  ;;  %v2912_v28 = vrot.slane %v2898_v16, %v3823_v21 }
  0x1f   : > { %v2387_v29 = vrot.slane %v2382_v22, %v3845_v55  ;;  %v2392_v30 = vcombine.low %v2366_v18, %v2373_v19  ;;  %v2473_v31 = vshrl.u32 %v3513_v14, 16  ;;  %v2481_v33 = vshrl.u32 %v3514_v15, 16  ;;  %v2620_v14 = vld [vmem:[%s4761_s1] sm:$0x44]  ;;  %v2621_v22 = vld [vmem:[%s4761_s1 + $0x8] sm:$0x44] }
  0x20   : > { %v2489_v34 = vshrl.u32 %v3515_v26, 16  ;;  %v2497_v35 = vshrl.u32 %v3516_v27, 16  ;;  %v3497_v36 = vcombine.low %v2006_v23, %v2006_v23  ;;  %v2913_v37 = vcombine.low %v2905_v24, %v2912_v28 }
  0x21   : > { %v2393_v38 = vcombine.low %v2380_v25, %v2387_v29  ;;  %v2400_v39 = vrot.slane %v2392_v30, %v3823_v21  ;;  %v2474_v40 = vpack.i.b16 %v2473_v31, %v2473_v31  ;;  %v2482_v41 = vpack.i.b16 %v2481_v33, %v2481_v33 }
  0x22   : > { %v2490_v42 = vpack.i.b16 %v2489_v34, %v2489_v34  ;;  %v2498_v43 = vpack.i.b16 %v2497_v35, %v2497_v35  ;;  %v3498_v44 = vcombine.high %v2006_v23, %v2006_v23  ;;  %2914 = vrot.lane.b32.xlu0 %v2913_v37, %s3753_s19  ;;  %v3499_v47 = vcombine.low %v2007_v32, %v2007_v32 }
  0x23   : > { %v2407_v45 = vrot.slane %v2393_v38, %v3823_v21  ;;  %v2479_v46 = vrot.slane %v2474_v40, %v3845_v55  ;;  %v3500_v48 = vcombine.high %v2007_v32, %v2007_v32  ;;  %v2487_v50 = vrot.slane %v2482_v41, %v3845_v55 }
  0x24   : > { %v2495_v51 = vrot.slane %v2490_v42, %v3845_v55  ;;  %v2503_v52 = vrot.slane %v2498_v43, %v3845_v55  ;;  %v2019_v53 = vpack.i.b16 %v3497_v36, %v3497_v36  ;;  %v2026_v56 = vpack.i.b16 %v3498_v44, %v3498_v44 }
  0x25   : > { %v2408_v54 = vcombine.low %v2400_v39, %v2407_v45  ;;  %v2033_v57 = vpack.i.b16 %v3499_v47, %v3499_v47  ;;  %v2040_v58 = vpack.i.b16 %v3500_v48, %v3500_v48  ;;  %v2508_v61 = vcombine.low %v2479_v46, %v2487_v50  ;;  %v2120_v39 = vld [vmem:[%s4761_s1 + $0x8] sm:$0x11] }
  0x26   : > { %v2509_v62 = vcombine.low %v2495_v51, %v2503_v52  ;;  %v2024_v63 = vrot.slane %v2019_v53, %v3820_v20  ;;  %v3493_v0 = vcombine.low %v1890_v49, %v1890_v49  ;;  %v2031_v1 = vrot.slane %v2026_v56, %v3820_v20 }
  0x27   : > { %2409 = vrot.lane.b32.xlu1 %v2408_v54, %s3754_s28  ;;  %v2038_v2 = vrot.slane %v2033_v57, %v3820_v20  ;;  %v2045_v3 = vrot.slane %v2040_v58, %v3820_v20  ;;  %v3494_v4 = vcombine.high %v1890_v49, %v1890_v49  ;;  %v2516_v5 = vrot.slane %v2508_v61, %v3823_v21  ;;  %v2231_v57 = vld [vmem:[%s4761_s1] sm:$0x11] }
  0x28   : > { %v2523_v6 = vrot.slane %v2509_v62, %v3823_v21  ;;  %v3495_v7 = vcombine.low %v1891_v59, %v1891_v59  ;;  %v3496_v9 = vcombine.high %v1891_v59, %v1891_v59  ;;  %v2050_v10 = vcombine.low %v2024_v63, %v2031_v1 }
  0x29   : > { %v2051_v11 = vcombine.low %v2038_v2, %v2045_v3  ;;  %v1903_v12 = vshrl.u32 %v3493_v0, 16  ;;  %v1911_v13 = vshrl.u32 %v3494_v4, 16  ;;  %v3913_v19 = vsub.s32 2, %v3811_v8  ;;  %v2119_v8 = vld [vmem:[%s4761_s1] sm:$0x11] }
  0x2a   : > { %v2524_v15 = vcombine.low %v2516_v5, %v2523_v6  ;;  %v1919_v16 = vshrl.u32 %v3495_v7, 16  ;;  %v1927_v18 = vshrl.u32 %v3496_v9, 16  ;;  %v2058_v23 = vrot.slane %v2050_v10, %v3823_v21  ;;  %v2232_v3 = vld [vmem:[%s4761_s1 + $0x8] sm:$0x11] }
  0x2b   : > { %v2065_v24 = vrot.slane %v2051_v11, %v3823_v21  ;;  %v1904_v25 = vpack.i.b16 %v1903_v12, %v1903_v12  ;;  %v1912_v26 = vpack.i.b16 %v1911_v13, %v1911_v13  ;;  %v3518_v29 = vcombine.low %v2620_v14, %v2620_v14  ;;  %v1661_v13 = vld [vmem:[%s4761_s1] sm:$0x44] }
  0x2c   : > { %2525 = vrot.lane.b32.xlu0 %v2524_v15, %s3755_s8  ;;  %v1920_v27 = vpack.i.b16 %v1919_v16, %v1919_v16  ;;  %v1928_v28 = vpack.i.b16 %v1927_v18, %v1927_v18  ;;  %v3519_v30 = vcombine.high %v2620_v14, %v2620_v14  ;;  %v3520_v34 = vcombine.low %v2621_v22, %v2621_v22 }
  0x2d   : > { %v2066_v31 = vcombine.low %v2058_v23, %v2065_v24  ;;  %v1909_v32 = vrot.slane %v1904_v25, %v3817_v17  ;;  %v1917_v33 = vrot.slane %v1912_v26, %v3817_v17  ;;  %v3521_v37 = vcombine.high %v2621_v22, %v2621_v22  ;;  %v1662_v26 = vld [vmem:[%s4761_s1 + $0x8] sm:$0x44] }
  0x2e   : > { %v1925_v35 = vrot.slane %v1920_v27, %v3817_v17  ;;  %v1933_v36 = vrot.slane %v1928_v28, %v3817_v17  ;;  %v2633_v38 = vshrl.u32 %v3518_v29, 16  ;;  %v2641_v41 = vshrl.u32 %v3519_v30, 16 }
  0x2f   : > { %2067 = vrot.lane.b32.xlu1 %v2066_v31, %s3756_s14  ;;  %v1938_v40 = vcombine.low %v1909_v32, %v1917_v33  ;;  %v2649_v42 = vshrl.u32 %v3520_v34, 16  ;;  %v3501_v43 = vcombine.low %v2119_v8, %v2119_v8  ;;  %v2657_v46 = vshrl.u32 %v3521_v37, 16 }
  0x30   : > { %v1939_v44 = vcombine.low %v1925_v35, %v1933_v36  ;;  %v2634_v45 = vpack.i.b16 %v2633_v38, %v2633_v38  ;;  %v3502_v47 = vcombine.high %v2119_v8, %v2119_v8  ;;  %v2642_v49 = vpack.i.b16 %v2641_v41, %v2641_v41  ;;  %v1062_v38 = vld [vmem:[%s4761_s1 + $0x10] sm:$0x11] }
  0x31   : > { %v1946_v48 = vrot.slane %v1938_v40, %v3823_v21  ;;  %v2650_v50 = vpack.i.b16 %v2649_v42, %v2649_v42  ;;  %v3503_v51 = vcombine.low %v2120_v39, %v2120_v39  ;;  %v2658_v54 = vpack.i.b16 %v2657_v46, %v2657_v46 }
  0x32   : > { %v1953_v52 = vrot.slane %v1939_v44, %v3823_v21  ;;  %v2639_v53 = vrot.slane %v2634_v45, %v3913_v19  ;;  %v3504_v56 = vcombine.high %v2120_v39, %v2120_v39  ;;  %v2647_v58 = vrot.slane %v2642_v49, %v3913_v19 }
  0x33   : > { %v2655_v59 = vrot.slane %v2650_v50, %v3913_v19  ;;  %v2132_v61 = vpack.i.b16 %v3501_v43, %v3501_v43  ;;  %v2139_v62 = vpack.i.b16 %v3502_v47, %v3502_v47  ;;  %v2663_v0 = vrot.slane %v2658_v54, %v3913_v19  ;;  %v1063_v47 = vld [vmem:[%s4761_s1 + $0x18] sm:$0x11] }
  0x34   : > { %v1954_v63 = vcombine.low %v1946_v48, %v1953_v52  ;;  %v2146_v1 = vpack.i.b16 %v3503_v51, %v3503_v51  ;;  %v2153_v2 = vpack.i.b16 %v3504_v56, %v3504_v56  ;;  %v2668_v4 = vcombine.low %v2639_v53, %v2647_v58 }
  0x35   : > { %v2137_v5 = vrot.slane %v2132_v61, %v3820_v20  ;;  %v2144_v6 = vrot.slane %v2139_v62, %v3820_v20  ;;  %v3505_v7 = vcombine.low %v2231_v57, %v2231_v57  ;;  %v2669_v9 = vcombine.low %v2655_v59, %v2663_v0 }
  0x36   : > { %1955 = vrot.lane.b32.xlu0 %v1954_v63, %s3757_s22  ;;  %v2151_v10 = vrot.slane %v2146_v1, %v3820_v20  ;;  %v2158_v11 = vrot.slane %v2153_v2, %v3820_v20  ;;  %v3506_v12 = vcombine.high %v2231_v57, %v2231_v57  ;;  %v2676_v14 = vrot.slane %v2668_v4, %v3823_v21  ;;  %v1522_v2 = vld [vmem:[%s4761_s1] sm:$0x22] }
  0x37   : > { %v2163_v15 = vcombine.low %v2137_v5, %v2144_v6  ;;  %v3507_v16 = vcombine.low %v2232_v3, %v2232_v3  ;;  %v3508_v18 = vcombine.high %v2232_v3, %v2232_v3  ;;  %v2683_v22 = vrot.slane %v2669_v9, %v3823_v21 }
  0x38   : > { %v2164_v23 = vcombine.low %v2151_v10, %v2158_v11  ;;  %v2244_v24 = vshrl.u32 %v3505_v7, 16  ;;  %v2252_v25 = vshrl.u32 %v3506_v12, 16  ;;  %v3485_v30 = vcombine.low %v1661_v13, %v1661_v13  ;;  %v1523_v12 = vld [vmem:[%s4761_s1 + $0x8] sm:$0x22] }
  0x39   : > { %v2171_v27 = vrot.slane %v2163_v15, %v3823_v21  ;;  %v2260_v28 = vshrl.u32 %v3507_v16, 16  ;;  %v2268_v29 = vshrl.u32 %v3508_v18, 16  ;;  %v2684_v8 = vcombine.low %v2676_v14, %v2683_v22  ;;  %v1777_v18 = vld [vmem:[%s4761_s1] sm:$0x88] }
  0x3a   : > { %v2178_v31 = vrot.slane %v2164_v23, %v3823_v21  ;;  %v2245_v32 = vpack.i.b16 %v2244_v24, %v2244_v24  ;;  %v2253_v33 = vpack.i.b16 %v2252_v25, %v2252_v25  ;;  %v3486_v36 = vcombine.high %v1661_v13, %v1661_v13 }
  0x3b   : > { %v2261_v34 = vpack.i.b16 %v2260_v28, %v2260_v28  ;;  %v2269_v35 = vpack.i.b16 %v2268_v29, %v2268_v29  ;;  %v3487_v37 = vcombine.low %v1662_v26, %v1662_v26  ;;  %2685 = vrot.lane.b32.xlu1 %v2684_v8, %s3758_s30  ;;  %v3488_v42 = vcombine.high %v1662_v26, %v1662_v26 }
  0x3c   : > { %v2179_v39 = vcombine.low %v2171_v27, %v2178_v31  ;;  %v2250_v40 = vrot.slane %v2245_v32, %v3820_v20  ;;  %v2258_v41 = vrot.slane %v2253_v33, %v3820_v20  ;;  %v1674_v45 = vshrl.u32 %v3485_v30, 16  ;;  %v1778_v32 = vld [vmem:[%s4761_s1 + $0x8] sm:$0x88] }
  0x3d   : > { %v2266_v43 = vrot.slane %v2261_v34, %v3820_v20  ;;  %v2274_v44 = vrot.slane %v2269_v35, %v3820_v20  ;;  %v1682_v46 = vshrl.u32 %v3486_v36, 16  ;;  %v1690_v49 = vshrl.u32 %v3487_v37, 16 }
  0x3e   : > { %2180 = vrot.lane.b32.xlu0 %v2179_v39, %s3759_s9  ;;  %v2279_v48 = vcombine.low %v2250_v40, %v2258_v41  ;;  %v1698_v50 = vshrl.u32 %v3488_v42, 16  ;;  %v3463_v51 = vcombine.low %v1062_v38, %v1062_v38  ;;  %v1675_v53 = vpack.i.b16 %v1674_v45, %v1674_v45 }
  0x3f   : > { %v2280_v52 = vcombine.low %v2266_v43, %v2274_v44  ;;  %v1683_v54 = vpack.i.b16 %v1682_v46, %v1682_v46  ;;  %v3464_v56 = vcombine.high %v1062_v38, %v1062_v38  ;;  %v1691_v58 = vpack.i.b16 %v1690_v49, %v1690_v49  ;;  %v1174_v46 = vld [vmem:[%s4761_s1] sm:$0x11] }
  0x40   : > { %v2287_v57 = vrot.slane %v2279_v48, %v3823_v21  ;;  %v1699_v59 = vpack.i.b16 %v1698_v50, %v1698_v50  ;;  %v3465_v61 = vcombine.low %v1063_v47, %v1063_v47  ;;  %v1680_v63 = vrot.slane %v1675_v53, %v3913_v19 }
  0x41   : > { %v2294_v62 = vrot.slane %v2280_v52, %v3823_v21  ;;  %v1688_v0 = vrot.slane %v1683_v54, %v3913_v19  ;;  %v3466_v1 = vcombine.high %v1063_v47, %v1063_v47  ;;  %v1696_v3 = vrot.slane %v1691_v58, %v3913_v19 }
  0x42   : > { %v1704_v4 = vrot.slane %v1699_v59, %v3913_v19  ;;  %v1075_v5 = vpack.i.b16 %v3463_v51, %v3463_v51  ;;  %v1082_v6 = vpack.i.b16 %v3464_v56, %v3464_v56  ;;  %v1089_v10 = vpack.i.b16 %v3465_v61, %v3465_v61  ;;  %v1175_v56 = vld [vmem:[%s4761_s1 + $0x8] sm:$0x11] }
  0x43   : > { %v2295_v7 = vcombine.low %v2287_v57, %v2294_v62  ;;  %v1709_v9 = vcombine.low %v1680_v63, %v1688_v0  ;;  %v1096_v11 = vpack.i.b16 %v3466_v1, %v3466_v1  ;;  %v3479_v16 = vcombine.low %v1522_v2, %v1522_v2 }
  0x44   : > { %v1710_v13 = vcombine.low %v1696_v3, %v1704_v4  ;;  %v1080_v14 = vrot.slane %v1075_v5, %v3820_v20  ;;  %v1087_v15 = vrot.slane %v1082_v6, %v3820_v20  ;;  %v1094_v23 = vrot.slane %v1089_v10, %v3820_v20 }
  0x45   : > { %2296 = vrot.lane.b32.xlu1 %v2295_v7, %s3760_s21  ;;  %v1717_v22 = vrot.slane %v1709_v9, %v3823_v21  ;;  %v1101_v24 = vrot.slane %v1096_v11, %v3820_v20  ;;  %v3480_v25 = vcombine.high %v1522_v2, %v1522_v2  ;;  %v3481_v28 = vcombine.low %v1523_v12, %v1523_v12  ;;  %v1289_v2 = vld [vmem:[%s4761_s1] sm:$0x11] }
  0x46   : > { %v1724_v26 = vrot.slane %v1710_v13, %v3823_v21  ;;  %v1106_v27 = vcombine.low %v1080_v14, %v1087_v15  ;;  %v3482_v29 = vcombine.high %v1523_v12, %v1523_v12  ;;  %v1535_v8 = vshrl.u32 %v3479_v16, 16  ;;  %v1290_v15 = vld [vmem:[%s4761_s1 + $0x8] sm:$0x11] }
  0x47   : > { %v1107_v30 = vcombine.low %v1094_v23, %v1101_v24  ;;  %v1543_v31 = vshrl.u32 %v3480_v25, 16  ;;  %v3489_v33 = vcombine.low %v1777_v18, %v1777_v18  ;;  %v1551_v36 = vshrl.u32 %v3481_v28, 16  ;;  %v1407_v25 = vld [vmem:[%s4761_s1] sm:$0x22] }
  0x48   : > { %v1725_v34 = vcombine.low %v1717_v22, %v1724_v26  ;;  %v1114_v35 = vrot.slane %v1106_v27, %v3823_v21  ;;  %v1559_v37 = vshrl.u32 %v3482_v29, 16  ;;  %v1536_v39 = vpack.i.b16 %v1535_v8, %v1535_v8 }
  0x49   : > { %v1121_v38 = vrot.slane %v1107_v30, %v3823_v21  ;;  %v1544_v40 = vpack.i.b16 %v1543_v31, %v1543_v31  ;;  %v3490_v41 = vcombine.high %v1777_v18, %v1777_v18  ;;  %v1552_v42 = vpack.i.b16 %v1551_v36, %v1551_v36 }
  0x4a   : > { %1726 = vrot.lane.b32.xlu1 %v1725_v34, %s3761_s25  ;;  %v1560_v43 = vpack.i.b16 %v1559_v37, %v1559_v37  ;;  %v3491_v44 = vcombine.low %v1778_v32, %v1778_v32  ;;  %v3492_v45 = vcombine.high %v1778_v32, %v1778_v32  ;;  %v1541_v48 = vrot.slane %v1536_v39, %v3845_v55 }
  0x4b   : > { %v1122_v47 = vcombine.low %v1114_v35, %v1121_v38  ;;  %v1549_v49 = vrot.slane %v1544_v40, %v3845_v55  ;;  %v1790_v50 = vpack.i.b16 %v3489_v33, %v3489_v33  ;;  %v1557_v51 = vrot.slane %v1552_v42, %v3845_v55  ;;  %v1408_v33 = vld [vmem:[%s4761_s1 + $0x8] sm:$0x22] }
  0x4c   : > { %v1565_v52 = vrot.slane %v1560_v43, %v3845_v55  ;;  %v1797_v53 = vpack.i.b16 %v3490_v41, %v3490_v41  ;;  %v1804_v54 = vpack.i.b16 %v3491_v44, %v3491_v44  ;;  %v1811_v59 = vpack.i.b16 %v3492_v45, %v3492_v45 }
  0x4d   : > { %v1570_v57 = vcombine.low %v1541_v48, %v1549_v49  ;;  %v1795_v58 = vrot.slane %v1790_v50, %v3817_v17  ;;  %v3467_v61 = vcombine.low %v1174_v46, %v1174_v46  ;;  %v3468_v1 = vcombine.high %v1174_v46, %v1174_v46  ;;  %v716_v50 = vld [vmem:[%s4761_s1] sm:$0x44] }
  0x4e   : > { %1123 = vrot.lane.b32.xlu1 %v1122_v47, %s3752_s12  ;;  %v1571_v62 = vcombine.low %v1557_v51, %v1565_v52  ;;  %v1802_v63 = vrot.slane %v1797_v53, %v3817_v17  ;;  %v1809_v0 = vrot.slane %v1804_v54, %v3817_v17  ;;  %v1816_v4 = vrot.slane %v1811_v59, %v3817_v17 }
  0x4f   : > { %v1578_v3 = vrot.slane %v1570_v57, %v3823_v21  ;;  %v3469_v5 = vcombine.low %v1175_v56, %v1175_v56  ;;  %v3470_v6 = vcombine.high %v1175_v56, %v1175_v56  ;;  %v1187_v10 = vpack.i.b16 %v3467_v61, %v3467_v61  ;;  %v717_v61 = vld [vmem:[%s4761_s1 + $0x8] sm:$0x44] }
  0x50   : > { %v1585_v7 = vrot.slane %v1571_v62, %v3823_v21  ;;  %v1821_v9 = vcombine.low %v1795_v58, %v1802_v63  ;;  %v1194_v11 = vpack.i.b16 %v3468_v1, %v3468_v1  ;;  %v1822_v12 = vcombine.low %v1809_v0, %v1816_v4 }
  0x51   : > { %v1201_v13 = vpack.i.b16 %v3469_v5, %v3469_v5  ;;  %v1208_v14 = vpack.i.b16 %v3470_v6, %v3470_v6  ;;  %v3471_v16 = vcombine.low %v1289_v2, %v1289_v2  ;;  %v1192_v23 = vrot.slane %v1187_v10, %v3820_v20  ;;  %v833_v6 = vld [vmem:[%s4761_s1] sm:$0x88] }
  0x52   : > { %v1586_v18 = vcombine.low %v1578_v3, %v1585_v7  ;;  %v1829_v22 = vrot.slane %v1821_v9, %v3823_v21  ;;  %v1199_v24 = vrot.slane %v1194_v11, %v3820_v20  ;;  %v1836_v26 = vrot.slane %v1822_v12, %v3823_v21 }
  0x53   : > { %v1206_v27 = vrot.slane %v1201_v13, %v3820_v20  ;;  %v1213_v28 = vrot.slane %v1208_v14, %v3820_v20  ;;  %v3472_v29 = vcombine.high %v1289_v2, %v1289_v2  ;;  %v3473_v8 = vcombine.low %v1290_v15, %v1290_v15 }
  0x54   : > { %1587 = vrot.lane.b32.xlu0 %v1586_v18, %s3762_s20  ;;  %v1218_v30 = vcombine.low %v1192_v23, %v1199_v24  ;;  %v3474_v31 = vcombine.high %v1290_v15, %v1290_v15  ;;  %v1302_v32 = vshrl.u32 %v3471_v16, 16  ;;  %v1837_v34 = vcombine.low %v1829_v22, %v1836_v26  ;;  %v834_v16 = vld [vmem:[%s4761_s1 + $0x8] sm:$0x88] }
  0x55   : > { %v1219_v35 = vcombine.low %v1206_v27, %v1213_v28  ;;  %v1310_v36 = vshrl.u32 %v3472_v29, 16  ;;  %v3475_v37 = vcombine.low %v1407_v25, %v1407_v25  ;;  %v1318_v40 = vshrl.u32 %v3473_v8, 16 }
  0x56   : > { %v1226_v38 = vrot.slane %v1218_v30, %v3823_v21  ;;  %v1303_v39 = vpack.i.b16 %v1302_v32, %v1302_v32  ;;  %v1326_v41 = vshrl.u32 %v3474_v31, 16  ;;  %v3476_v44 = vcombine.high %v1407_v25, %v1407_v25  ;;  %v945_v32 = vld [vmem:[%s4761_s1] sm:$0x88] }
  0x57   : > { %v1233_v42 = vrot.slane %v1219_v35, %v3823_v21  ;;  %v1311_v43 = vpack.i.b16 %v1310_v36, %v1310_v36  ;;  %v3477_v45 = vcombine.low %v1408_v33, %v1408_v33  ;;  %v1319_v47 = vpack.i.b16 %v1318_v40, %v1318_v40 }
  0x58   : > { %1838 = vrot.lane.b32.xlu0 %v1837_v34, %s3763_s26  ;;  %v1308_v46 = vrot.slane %v1303_v39, %v3820_v20  ;;  %v1327_v48 = vpack.i.b16 %v1326_v41, %v1326_v41  ;;  %v3478_v49 = vcombine.high %v1408_v33, %v1408_v33  ;;  %v1420_v53 = vpack.i.b16 %v3475_v37, %v3475_v37  ;;  %v946_v41 = vld [vmem:[%s4761_s1 + $0x8] sm:$0x88] }
  0x59   : > { %v1234_v51 = vcombine.low %v1226_v38, %v1233_v42  ;;  %v1316_v52 = vrot.slane %v1311_v43, %v3820_v20  ;;  %v1427_v54 = vpack.i.b16 %v3476_v44, %v3476_v44  ;;  %v1324_v56 = vrot.slane %v1319_v47, %v3820_v20 }
  0x5a   : > { %v1332_v57 = vrot.slane %v1327_v48, %v3820_v20  ;;  %v1434_v58 = vpack.i.b16 %v3477_v45, %v3477_v45  ;;  %v1441_v59 = vpack.i.b16 %v3478_v49, %v3478_v49  ;;  %v1425_v63 = vrot.slane %v1420_v53, %v3845_v55 }
  0x5b   : > { %v1337_v62 = vcombine.low %v1308_v46, %v1316_v52  ;;  %v1432_v0 = vrot.slane %v1427_v54, %v3845_v55  ;;  %v3451_v1 = vcombine.low %v716_v50, %v716_v50  ;;  %v3452_v5 = vcombine.high %v716_v50, %v716_v50 }
  0x5c   : > { %1235 = vrot.lane.b32.xlu0 %v1234_v51, %s3764_s10  ;;  %v1338_v2 = vcombine.low %v1324_v56, %v1332_v57  ;;  %v1439_v3 = vrot.slane %v1434_v58, %v3845_v55  ;;  %v1446_v4 = vrot.slane %v1441_v59, %v3845_v55  ;;  %v3453_v10 = vcombine.low %v717_v61, %v717_v61 }
  0x5d   : > { %v1345_v7 = vrot.slane %v1337_v62, %v3823_v21  ;;  %v1451_v9 = vcombine.low %v1425_v63, %v1432_v0  ;;  %v3454_v11 = vcombine.high %v717_v61, %v717_v61  ;;  %v729_v14 = vshrl.u32 %v3451_v1, 16  ;;  %v321_v63 = vld [vmem:[%s4761_s1 + $0x8] sm:$0x11] }
  0x5e   : > { %v1352_v12 = vrot.slane %v1338_v2, %v3823_v21  ;;  %v1452_v13 = vcombine.low %v1439_v3, %v1446_v4  ;;  %v737_v15 = vshrl.u32 %v3452_v5, 16  ;;  %v745_v22 = vshrl.u32 %v3453_v10, 16 }
  0x5f   : > { %v1459_v18 = vrot.slane %v1451_v9, %v3823_v21  ;;  %v753_v23 = vshrl.u32 %v3454_v11, 16  ;;  %v3455_v24 = vcombine.low %v833_v6, %v833_v6  ;;  %v730_v27 = vpack.i.b16 %v729_v14, %v729_v14  ;;  %v205_v14 = vld [vmem:[%s4761_s1] sm:$0x11] }
  0x60   : > { %v1353_v25 = vcombine.low %v1345_v7, %v1352_v12  ;;  %v1466_v26 = vrot.slane %v1452_v13, %v3823_v21  ;;  %v738_v28 = vpack.i.b16 %v737_v15, %v737_v15  ;;  %v746_v29 = vpack.i.b16 %v745_v22, %v745_v22 }
  0x61   : > { %v754_v30 = vpack.i.b16 %v753_v23, %v753_v23  ;;  %v3456_v8 = vcombine.high %v833_v6, %v833_v6  ;;  %v3457_v31 = vcombine.low %v834_v16, %v834_v16  ;;  %v735_v34 = vrot.slane %v730_v27, %v3913_v19  ;;  %v206_v27 = vld [vmem:[%s4761_s1 + $0x8] sm:$0x11] }
  0x62   : > { %1354 = vrot.lane.b32.xlu1 %v1353_v25, %s3765_s27  ;;  %v1467_v33 = vcombine.low %v1459_v18, %v1466_v26  ;;  %v743_v35 = vrot.slane %v738_v28, %v3913_v19  ;;  %v3458_v36 = vcombine.high %v834_v16, %v834_v16  ;;  %v751_v37 = vrot.slane %v746_v29, %v3913_v19 }
  0x63   : > { %v759_v38 = vrot.slane %v754_v30, %v3913_v19  ;;  %v846_v39 = vpack.i.b16 %v3455_v24, %v3455_v24  ;;  %v853_v40 = vpack.i.b16 %v3456_v8, %v3456_v8  ;;  %v860_v43 = vpack.i.b16 %v3457_v31, %v3457_v31  ;;  %v320_v19 = vld [vmem:[%s4761_s1] sm:$0x11] }
  0x64   : > { %1468 = vrot.lane.b32.xlu0 %v1467_v33, %s3766_s6  ;;  %v764_v42 = vcombine.low %v735_v34, %v743_v35  ;;  %v867_v44 = vpack.i.b16 %v3458_v36, %v3458_v36  ;;  %v3459_v45 = vcombine.low %v945_v32, %v945_v32  ;;  %v3460_v49 = vcombine.high %v945_v32, %v945_v32 }
  0x65   : > { %v765_v46 = vcombine.low %v751_v37, %v759_v38  ;;  %v851_v47 = vrot.slane %v846_v39, %v3817_v17  ;;  %v858_v48 = vrot.slane %v853_v40, %v3817_v17  ;;  %v865_v51 = vrot.slane %v860_v43, %v3817_v17  ;;  %v553_v38 = vld [vmem:[%s4761_s1] sm:$0x22] }
  0x66   : > { %v772_v50 = vrot.slane %v764_v42, %v3823_v21  ;;  %v872_v52 = vrot.slane %v867_v44, %v3817_v17  ;;  %v3461_v53 = vcombine.low %v946_v41, %v946_v41  ;;  %v3462_v57 = vcombine.high %v946_v41, %v946_v41 }
  0x67   : > { %v779_v54 = vrot.slane %v765_v46, %v3823_v21  ;;  %v877_v56 = vcombine.low %v851_v47, %v858_v48  ;;  %v958_v58 = vshrl.u32 %v3459_v45, 16  ;;  %v966_v61 = vshrl.u32 %v3460_v49, 16  ;;  %v554_v47 = vld [vmem:[%s4761_s1 + $0x8] sm:$0x22] }
  0x68   : > { %v878_v59 = vcombine.low %v865_v51, %v872_v52  ;;  %v974_v62 = vshrl.u32 %v3461_v53, 16  ;;  %v3438_v0 = vcombine.low %v320_v19, %v320_v19  ;;  %v982_v4 = vshrl.u32 %v3462_v57, 16 }
  0x69   : > { %v780_v1 = vcombine.low %v772_v50, %v779_v54  ;;  %v885_v2 = vrot.slane %v877_v56, %v3823_v21  ;;  %v959_v3 = vpack.i.b16 %v958_v58, %v958_v58  ;;  %v967_v6 = vpack.i.b16 %v966_v61, %v966_v61  ;;  %v439_v56 = vld [vmem:[%s4761_s1] sm:$0x22] }
  0x6a   : > { %v892_v5 = vrot.slane %v878_v59, %v3823_v21  ;;  %v975_v7 = vpack.i.b16 %v974_v62, %v974_v62  ;;  %v3439_v9 = vcombine.high %v320_v19, %v320_v19  ;;  %v983_v11 = vpack.i.b16 %v982_v4, %v982_v4 }
  0x6b   : > { %781 = vrot.lane.b32.xlu1 %v780_v1, %s3758_s30  ;;  %v964_v10 = vrot.slane %v959_v3, %v3817_v17  ;;  %v3440_v12 = vcombine.low %v321_v63, %v321_v63  ;;  %v3441_v13 = vcombine.high %v321_v63, %v321_v63  ;;  %v972_v16 = vrot.slane %v967_v6, %v3817_v17 }
  0x6c   : > { %v893_v15 = vcombine.low %v885_v2, %v892_v5  ;;  %v980_v18 = vrot.slane %v975_v7, %v3817_v17  ;;  %v333_v22 = vshrl.u32 %v3438_v0, 16  ;;  %v988_v23 = vrot.slane %v983_v11, %v3817_v17 }
  0x6d   : > { %v341_v24 = vshrl.u32 %v3439_v9, 16  ;;  %v349_v25 = vshrl.u32 %v3440_v12, 16  ;;  %v357_v26 = vshrl.u32 %v3441_v13, 16  ;;  %v993_v28 = vcombine.low %v964_v10, %v972_v16 }
  0x6e   : > { %894 = vrot.lane.b32.xlu0 %v893_v15, %s3751_s7  ;;  %v334_v29 = vpack.i.b16 %v333_v22, %v333_v22  ;;  %v3434_v30 = vcombine.low %v205_v14, %v205_v14  ;;  %v3435_v8 = vcombine.high %v205_v14, %v205_v14  ;;  %v994_v31 = vcombine.low %v980_v18, %v988_v23 }
  0x6f   : > { %v342_v32 = vpack.i.b16 %v341_v24, %v341_v24  ;;  %v350_v33 = vpack.i.b16 %v349_v25, %v349_v25  ;;  %v358_v34 = vpack.i.b16 %v357_v26, %v357_v26  ;;  %v1001_v35 = vrot.slane %v993_v28, %v3823_v21 }
  0x70   : > { %v339_v17 = vrot.slane %v334_v29, %v3820_v20  ;;  %v3436_v36 = vcombine.low %v206_v27, %v206_v27  ;;  %v3437_v37 = vcombine.high %v206_v27, %v206_v27  ;;  %v1008_v39 = vrot.slane %v994_v31, %v3823_v21 }
  0x71   : > { %v347_v40 = vrot.slane %v342_v32, %v3820_v20  ;;  %v355_v41 = vrot.slane %v350_v33, %v3820_v20  ;;  %v363_v42 = vrot.slane %v358_v34, %v3820_v20  ;;  %v218_v43 = vpack.i.b16 %v3434_v30, %v3434_v30 }
  0x72   : > { %v225_v44 = vpack.i.b16 %v3435_v8, %v3435_v8  ;;  %v232_v45 = vpack.i.b16 %v3436_v36, %v3436_v36  ;;  %v239_v46 = vpack.i.b16 %v3437_v37, %v3437_v37  ;;  %v1009_v48 = vcombine.low %v1001_v35, %v1008_v39 }
  0x73   : > { %v368_v49 = vcombine.low %v339_v17, %v347_v40  ;;  %v369_v19 = vcombine.low %v355_v41, %v363_v42  ;;  %v3446_v50 = vcombine.low %v553_v38, %v553_v38  ;;  %v223_v51 = vrot.slane %v218_v43, %v3820_v20 }
  0x74   : > { %v230_v52 = vrot.slane %v225_v44, %v3820_v20  ;;  %v237_v53 = vrot.slane %v232_v45, %v3820_v20  ;;  %v244_v54 = vrot.slane %v239_v46, %v3820_v20  ;;  %1010 = vrot.lane.b32.xlu1 %v1009_v48, %s3753_s19  ;;  %v3447_v59 = vcombine.high %v553_v38, %v553_v38  ;;  %v440_v20 = vld [vmem:[%s4761_s1 + $0x8] sm:$0x22] }
  0x75   : > { %v376_v57 = vrot.slane %v368_v49, %v3823_v21  ;;  %v383_v58 = vrot.slane %v369_v19, %v3823_v21  ;;  %v3448_v61 = vcombine.low %v554_v47, %v554_v47  ;;  %v3449_v0 = vcombine.high %v554_v47, %v554_v47 }
  0x76   : > { %v249_v62 = vcombine.low %v223_v51, %v230_v52  ;;  %v250_v63 = vcombine.low %v237_v53, %v244_v54  ;;  %v566_v1 = vshrl.u32 %v3446_v50, 16  ;;  %v574_v3 = vshrl.u32 %v3447_v59, 16 }
  0x77   : > { %v384_v2 = vcombine.low %v376_v57, %v383_v58  ;;  %v582_v4 = vshrl.u32 %v3448_v61, 16  ;;  %v3442_v5 = vcombine.low %v439_v56, %v439_v56  ;;  %v590_v10 = vshrl.u32 %v3449_v0, 16 }
  0x78   : > { %v257_v6 = vrot.slane %v249_v62, %v3823_v21  ;;  %v264_v7 = vrot.slane %v250_v63, %v3823_v21  ;;  %v567_v9 = vpack.i.b16 %v566_v1, %v566_v1  ;;  %v575_v11 = vpack.i.b16 %v574_v3, %v574_v3 }
  0x79   : > { %385 = vrot.lane.b32.xlu1 %v384_v2, %s3760_s21  ;;  %v583_v12 = vpack.i.b16 %v582_v4, %v582_v4  ;;  %v3443_v13 = vcombine.high %v439_v56, %v439_v56  ;;  %v3444_v14 = vcombine.low %v440_v20, %v440_v20  ;;  %v591_v18 = vpack.i.b16 %v590_v10, %v590_v10 }
  0x7a   : > { %v265_v15 = vcombine.low %v257_v6, %v264_v7  ;;  %v572_v16 = vrot.slane %v567_v9, %v3845_v55  ;;  %v3445_v22 = vcombine.high %v440_v20, %v440_v20  ;;  %v580_v23 = vrot.slane %v575_v11, %v3845_v55 }
  0x7b   : > { %v588_v24 = vrot.slane %v583_v12, %v3845_v55  ;;  %v452_v25 = vpack.i.b16 %v3442_v5, %v3442_v5  ;;  %v459_v26 = vpack.i.b16 %v3443_v13, %v3443_v13  ;;  %v596_v27 = vrot.slane %v591_v18, %v3845_v55 }
  0x7c   : > { %266 = vrot.lane.b32.xlu0 %v265_v15, %s3759_s9  ;;  %v466_v28 = vpack.i.b16 %v3444_v14, %v3444_v14  ;;  %v473_v29 = vpack.i.b16 %v3445_v22, %v3445_v22  ;;  %v601_v30 = vcombine.low %v572_v16, %v580_v23  ;;  %v3767_v35 = vmov 0  }
  0x7d   : > { %v457_v8 = vrot.slane %v452_v25, %v3845_v55  ;;  %v464_v31 = vrot.slane %v459_v26, %v3845_v55  ;;  %v602_v32 = vcombine.low %v588_v24, %v596_v27  ;;  %200 = vst [vmem:[#allocation2 + $0xa] sm:$0x3] %v3767_v35  ;;  %199 = vst [vmem:[#allocation2] sm:$0x3] %v3767_v35  ;;  %3308 = vmatprep.mubr.bf16.mxu0 %v3767_v35  ;;  %vm503_vm0 = vcmask 465920  }
  0x7e   : > { %v471_v33 = vrot.slane %v466_v28, %v3845_v55  ;;  %v478_v34 = vrot.slane %v473_v29, %v3845_v55  ;;  %3351 = vmatprep.mubr.bf16.mxu1 %v3767_v35  ;;  %v609_v17 = vrot.slane %v601_v30, %v3823_v21  ;;  %3598 = vset.pattern.permute.xlu0 %v3767_v35  ;;  %vm1279_vm1 = vcmask 72704   ;;  %v1061_v26 = vld [vmem:[#allocation2 + $0x8] sm:$0x3] }
  0x7f   : > { %v483_v36 = vcombine.low %v457_v8, %v464_v31  ;;  %v616_v37 = vrot.slane %v602_v32, %v3823_v21  ;;  %3599 = vset.pattern.permute.xlu1 %v3767_v35  ;;  %v2579_v55 = vcombine.high %v3899_v60, %v3899_v60  ;;  %v2586_v43 = vrot.slane %v3899_v60, %v3823_v21 }
  0x80   : > { %v484_v38 = vcombine.low %v471_v33, %v478_v34  ;;  %vm269_vm2 = vcmask 449536   ;;  %vm4767_vm3 = vcmask 580608   ;;  %vm310_vm4 = vcmask 596992  }
  0x81   : > { %v491_v39 = vrot.slane %v483_v36, %v3823_v21  ;;  %v617_v40 = vcombine.low %v609_v17, %v616_v37  ;;  %v2593_v44 = vrot.slane %v2579_v55, %v3823_v21  ;;  %vm621_vm5 = vcmask 515072   ;;  %v1521_v36 = vld [vmem:[#allocation2 + $0x8] sm:$0x3] }
  0x82   : > { %v498_v41 = vrot.slane %v484_v38, %v3823_v21  ;;  %vm662_vm6 = vcmask 531456   ;;  %vm4765_vm7 = vcmask 56320   ;;  %vm4766_vm8 = vcmask 64512  }
  0x83   : > { %618 = vrot.lane.b32.xlu1 %v617_v40, %s3755_s8  ;;  %vm388_vm9 = vcmask 457728   ;;  %vm429_vm10 = vcmask 588800   ;;  %vm1590_vm11 = vcmask 1039360   ;;  %vm1630_vm12 = vcmask 7168  }
  0x84   : > { %v499_v42 = vcombine.low %v491_v39, %v498_v41  ;;  %v3517_v45 = vld.sshfl [vmem:[#allocation2 + $0xa] sm:$0x3 pattern:$0x76325410]  ;;  %vm1238_vm13 = vcmask 973824   ;;  %vm1357_vm14 = vcmask 982016  }
  0x85   : > { %v2736_v47 = vld [vmem:[#allocation2 + $0xa] sm:$0x3]  ;;  %vm308_vm15 = vcmask 1043456  }
  0x86   : > { %500 = vrot.lane.b32.xlu0 %v499_v42, %s3754_s28  ;;  %v2965_v50 = vld [vmem:[#allocation2 + $0xa] sm:$0x3] }
  0x87   : > { %2601 = vrot.lane.b32.xlu1 %v2586_v43, %s3768_s11  ;;  %v2347_v57 = vld [vmem:[#allocation2 + $0xa] sm:$0x3] }
  0x88   : > { %v2118_v2 = vld [vmem:[#allocation2 + $0xa] sm:$0x3] }
  0x89   : > { %v1889_v11 = vld [vmem:[#allocation2 + $0xa] sm:$0x3] }
  0x8a   : > { %2603 = vrot.lane.b32.xlu0 %v2593_v44, %s3768_s11  ;;  %v1660_v43 = vld [vmem:[#allocation2 + $0xa] sm:$0x3] }
  0x8b   : > { %v2799_v46 = vpop.permute.xlu0 %2798  ;;  %2605 = vrot.lane.b32.xlu1 %v3517_v45, %s3768_s11  ;;  %v3741_v45 = vld [vmem:[#allocation2 + $0x2] sm:$0xff] }
  0x8c   : > { %v2800_v48 = vrot.slane %v2799_v46, 6 }
  0x8e   : > { %v2805_v49 = vmul.bf16 %v2800_v48, %v2736_v47  ;;  %v3028_v19 = vpop.permute.xlu1 %3027  ;;  %v2801_v30 = vsel %vm4767_vm3, %v2800_v48, %v2799_v46 }
  0x8f   : > { %v3029_v51 = vrot.slane %v3028_v19, 6  ;;  %v4202_v32 = vmul.bf16 %v2801_v30, %v3899_v60 }
  0x90   : > { %v2829_v52 = vrot.slane %v2805_v49, %v3823_v21 }
  0x91   : > { %v3034_v53 = vmul.bf16 %v3029_v51, %v2965_v50  ;;  %v3030_v35 = vsel %vm310_vm4, %v3029_v51, %v3028_v19  ;;  %v2815_v42 = vrot.slane %v4202_v32, %v3823_v21 }
  0x92   : > { %2834 = vrot.lane.b32.xlu0 %v2829_v52, %s3754_s28  ;;  %v4216_v40 = vmul.bf16 %v3030_v35, %v3899_v60 }
  0x93   : > { %v3058_v54 = vrot.slane %v3034_v53, %v3823_v21 }
  0x94   : > { %v4156_v61 = vpop.permute.xlu0 %2914  ;;  %v3044_v19 = vrot.slane %v4216_v40, %v3823_v21 }
  0x96   : > { %3063 = vrot.lane.b32.xlu0 %v3058_v54, %s3759_s9 }
  0x99   : > { %v2410_v56 = vpop.permute.xlu1 %2409 }
  0x9a   : > { %v2411_v58 = vrot.slane %v2410_v56, 6 }
  0x9c   : > { %v2416_v59 = vmul.bf16 %v2411_v58, %v2347_v57  ;;  %v2412_v5 = vsel %vm503_vm0, %v2411_v58, %v2410_v56  ;;  %v2916_v58 = vrot.slane %v4156_v61, 6 }
  0x9d   : > { %v4170_v7 = vmul.bf16 %v2412_v5, %v3899_v60 }
  0x9e   : > { %v2440_v62 = vrot.slane %v2416_v59, %v3823_v21  ;;  %v4160_v63 = vpop.permute.xlu0 %2525  ;;  %v4246_v59 = vld [vmem:[#allocation2] sm:$0xff] }
  0x9f   : > { %v2426_v15 = vrot.slane %v4170_v7, %v3823_v21  ;;  %v2527_v31 = vrot.slane %v4160_v63, 6 }
  0xa0   : > { %2445 = vrot.lane.b32.xlu1 %v2440_v62, %s3751_s7 }
  0xa1   : > { %v4164_v1 = vpop.permute.xlu1 %2067  ;;  %v2528_v38 = vsel %vm621_vm5, %v2527_v31, %v4160_v63 }
  0xa2   : > { %v2069_v10 = vrot.slane %v4164_v1, 6  ;;  %v4221_v46 = vmul.bf16 %v3741_v45, %v2528_v38  ;;  %v2808_v38 = vcombine.high %v4202_v32, %v4202_v32 }
  0xa4   : > { %v2070_v16 = vsel %vm1279_vm1, %v2069_v10, %v4164_v1  ;;  %v2549_v52 = vrot.slane %v4221_v46, %v3823_v21  ;;  %v2822_v32 = vrot.slane %v2808_v38, %v3823_v21 }
  0xa5   : > { %v4188_v22 = vmul.bf16 %v2070_v16, %v3899_v60 }
  0xa7   : > { %v2091_v29 = vrot.slane %v4188_v22, %v3823_v21 }
  0xa8   : > { %v4162_v0 = vpop.permute.xlu0 %1955 }
  0xa9   : > { %v1957_v12 = vrot.slane %v4162_v0, 6 }
  0xab   : > { %v1962_v14 = vmul.bf16 %v1957_v12, %v1889_v11  ;;  %v1958_v53 = vsel %vm4766_vm8, %v1957_v12, %v4162_v0  ;;  %vm1471_vm8 = vcmask 990208  }
  0xad   : > { %v4166_v3 = vpop.permute.xlu1 %2685  ;;  %v1986_v23 = vrot.slane %v1962_v14, %v3823_v21 }
  0xae   : > { %v2687_v39 = vrot.slane %v4166_v3, 6 }
  0xb0   : > { %v2181_v20 = vpop.permute.xlu0 %2180 }
  0xb1   : > { %v2182_v4 = vrot.slane %v2181_v20, 6 }
  0xb3   : > { %v2187_v6 = vmul.bf16 %v2182_v4, %v2118_v2  ;;  %v2183_v24 = vsel %vm269_vm2, %v2182_v4, %v2181_v20  ;;  %v4249_v20 = vmul.bf16 %v3741_v45, %v1958_v53 }
  0xb4   : > { %v4194_v27 = vmul.bf16 %v2183_v24, %v3899_v60  ;;  %v2688_v60 = vsel %vm662_vm6, %v2687_v39, %v4166_v3 }
  0xb5   : > { %v2211_v9 = vrot.slane %v2187_v6, %v3823_v21  ;;  %v4233_v51 = vmul.bf16 %v3741_v45, %v2688_v60  ;;  %v2917_v6 = vsel %vm429_vm10, %v2916_v58, %v4156_v61  ;;  %v1972_v12 = vrot.slane %v4249_v20, %v3823_v21 }
  0xb6   : > { %v2197_v34 = vrot.slane %v4194_v27, %v3823_v21  ;;  %v4272_v16 = vmul.bf16 %v3741_v45, %v2917_v6 }
  0xb7   : > { %v4175_v13 = vpop.permute.xlu1 %2296  ;;  %2216 = vrot.lane.b32.xlu1 %v2211_v9, %s3752_s12  ;;  %v2709_v0 = vrot.slane %v4233_v51, %v3823_v21  ;;  %v2005_v9 = vld [vmem:[#allocation2 + $0xa] sm:$0x3] }
  0xb8   : > { %v2298_v54 = vrot.slane %v4175_v13, 6 }
  0xba   : > { %v2299_v2 = vsel %vm388_vm9, %v2298_v54, %v4175_v13 }
  0xbb   : > { %2441 = vrot.lane.b32.xlu1 %v2426_v15, %s3751_s7  ;;  %v4266_v11 = vmul.bf16 %v3741_v45, %v2299_v2  ;;  %v1776_v15 = vld [vmem:[#allocation2 + $0xa] sm:$0x3] }
  0xbc   : > { %v4185_v18 = vpop.permute.xlu1 %1726  ;;  %v2230_v2 = vld [vmem:[#allocation2 + $0xa] sm:$0x3] }
  0xbd   : > { %v1728_v41 = vrot.slane %v4185_v18, 6 }
  0xbf   : > { %1991 = vrot.lane.b32.xlu1 %v1986_v23, %s3765_s27  ;;  %v1733_v49 = vmul.bf16 %v1728_v41, %v1660_v43  ;;  %v2074_v23 = vmul.bf16 %v2069_v10, %v2005_v9  ;;  %v1729_v10 = vsel %vm1630_vm12, %v1728_v41, %v4185_v18  ;;  %v2419_v43 = vcombine.high %v4170_v7, %v4170_v7 }
  0xc0   : > { %v1124_v25 = vpop.permute.xlu1 %1123  ;;  %v2190_v9 = vcombine.high %v4194_v27, %v4194_v27 }
  0xc1   : > { %v1125_v28 = vrot.slane %v1124_v25, 6  ;;  %v1757_v57 = vrot.slane %v1733_v49, %v3823_v21  ;;  %v2092_v1 = vcombine.low %v2074_v23, %v2074_v23 }
  0xc2   : > { %v2204_v27 = vrot.slane %v2190_v9, %v3823_v21 }
  0xc3   : > { %v1130_v8 = vmul.bf16 %v1125_v28, %v1061_v26  ;;  %2102 = vrot.lane.b32.xlu1 %v2091_v29, %s3764_s10  ;;  %v1126_v62 = vsel %vm310_vm4, %v1125_v28, %v1124_v25  ;;  %v2320_v26 = vrot.slane %v4266_v11, %v3823_v21  ;;  %v2938_v28 = vrot.slane %v4272_v16, %v3823_v21 }
  0xc4   : > { %v4259_v4 = vmul.bf16 %v1126_v62, %v4246_v59  ;;  %v2099_v35 = vrot.slane %v2092_v1, %v3823_v21  ;;  %v2077_v62 = vcombine.low %v4188_v22, %v4188_v22  ;;  %v1173_v1 = vld [vmem:[#allocation2 + $0x8] sm:$0x3] }
  0xc5   : > { %v1154_v33 = vrot.slane %v1130_v8, %v3823_v21 }
  0xc6   : > { %v1588_v17 = vpop.permute.xlu0 %1587  ;;  %v1140_v24 = vrot.slane %v4259_v4, %v3823_v21  ;;  %v2084_v22 = vrot.slane %v2077_v62, %v3823_v21 }
  0xc7   : > { %1159 = vrot.lane.b32.xlu0 %v1154_v33, %s3759_s9  ;;  %v1589_v37 = vrot.slane %v1588_v17, 6  ;;  %2212 = vrot.lane.b32.xlu1 %v2197_v34, %s3752_s12  ;;  %v2848_v33 = vld [vmem:[#allocation2 + $0xa] sm:$0x3]  ;;  %v4295_v34 = vmul.bf16 %v3741_v45, %v1729_v10 }
  0xc9   : > { %v1595_v55 = vmul.bf16 %v1589_v37, %v1521_v36  ;;  %v1591_v14 = vsel %vm1590_vm11, %v1589_v37, %v1588_v17  ;;  %v2459_v17 = vld [vmem:[#allocation2 + $0xa] sm:$0x3]  ;;  %v2921_v37 = vmul.bf16 %v2916_v58, %v2848_v33 }
  0xca   : > { %v1839_v44 = vpop.permute.xlu0 %1838  ;;  %v4280_v61 = vmul.bf16 %v1591_v14, %v4246_v59 }
  0xcb   : > { %2830 = vrot.lane.b32.xlu0 %v2815_v42, %s3754_s28  ;;  %v1840_v47 = vrot.slane %v1839_v44, 6  ;;  %v1619_v48 = vrot.slane %v1595_v55, %v3823_v21  ;;  %v2532_v55 = vmul.bf16 %v2527_v31, %v2459_v17  ;;  %v1743_v42 = vrot.slane %v4295_v34, %v3823_v21 }
  0xcc   : > { %v1605_v8 = vrot.slane %v4280_v61, %v3823_v21  ;;  %v2433_v31 = vrot.slane %v2419_v43, %v3823_v21 }
  0xcd   : > { %1624 = vrot.lane.b32.xlu1 %v1619_v48, %s3761_s25  ;;  %v1841_v50 = vsel %vm4765_vm7, %v1840_v47, %v1839_v44  ;;  %v1845_v25 = vmul.bf16 %v1840_v47, %v1776_v15  ;;  %v2619_v44 = vld [vmem:[#allocation2 + $0xa] sm:$0x3]  ;;  %v2939_v47 = vcombine.low %v2921_v37, %v2921_v37  ;;  %v2550_v48 = vcombine.low %v2532_v55, %v2532_v55 }
  0xce   : > { %v4241_v56 = vmul.bf16 %v3741_v45, %v1841_v50  ;;  %v4299_v36 = vpop.permute.xlu0 %1235  ;;  %v2692_v63 = vmul.bf16 %v2687_v39, %v2619_v44  ;;  %vm706_vm7 = vcmask 523264   ;;  %v1736_v37 = vcombine.high %v4295_v34, %v4295_v34 }
  0xcf   : > { %3059 = vrot.lane.b32.xlu0 %v3044_v19, %s3759_s9  ;;  %v1863_v30 = vcombine.low %v1845_v25, %v1845_v25  ;;  %v1237_v60 = vrot.slane %v4299_v36, 6  ;;  %v2946_v7 = vrot.slane %v2939_v47, %v3823_v21  ;;  %v3037_v19 = vcombine.high %v4216_v40, %v4216_v40 }
  0xd0   : > { %v1862_v5 = vrot.slane %v4241_v56, %v3823_v21  ;;  %v2710_v3 = vcombine.low %v2692_v63, %v2692_v63  ;;  %v2557_v39 = vrot.slane %v2550_v48, %v3823_v21  ;;  %v1848_v53 = vcombine.low %v4241_v56, %v4241_v56 }
  0xd1   : > { %2560 = vrot.lane.b32.xlu1 %v2549_v52, %s3758_s30  ;;  %v1870_v18 = vrot.slane %v1863_v30, %v3823_v21  ;;  %v1239_v52 = vsel %vm1238_vm13, %v1237_v60, %v4299_v36  ;;  %v1133_v56 = vcombine.high %v4259_v4, %v4259_v4 }
  0xd2   : > { %v2717_v40 = vrot.slane %v2710_v3, %v3823_v21  ;;  %v1855_v6 = vrot.slane %v1848_v53, %v3823_v21  ;;  %v2306_v3 = vcombine.low %v4266_v11, %v4266_v11 }
  0xd3   : > { %1762 = vrot.lane.b32.xlu0 %v1757_v57, %s3762_s20  ;;  %v3051_v57 = vrot.slane %v3037_v19, %v3823_v21  ;;  %v1147_v4 = vrot.slane %v1133_v56, %v3823_v21  ;;  %v1406_v19 = vld [vmem:[#allocation2 + $0x8] sm:$0x3] }
  0xd4   : > { %v4290_v29 = vpop.permute.xlu1 %1354  ;;  %v2313_v56 = vrot.slane %v2306_v3, %v3823_v21 }
  0xd5   : > { %2720 = vrot.lane.b32.xlu1 %v2709_v0, %s3755_s8  ;;  %v4346_v0 = vmul.bf16 %v1239_v52, %v4246_v59  ;;  %v1356_v25 = vrot.slane %v4290_v29, 6  ;;  %v1638_v52 = vld [vmem:[#allocation2 + $0x2] sm:$0xff] }
  0xd6   : > { %v4314_v45 = vpop.permute.xlu0 %1468  ;;  %3484 = vst.sshfl [vmem:[#allocation3 + $0x68] sm:$0xf0 pattern:$0x76325410] %v1638_v52 }
  0xd7   : > { %1873 = vrot.lane.b32.xlu0 %v1862_v5, %s3766_s6  ;;  %v1246_v14 = vcombine.low %v4346_v0, %v4346_v0  ;;  %v1470_v17 = vrot.slane %v4314_v45, 6 }
  0xd9   : > { %1987 = vrot.lane.b32.xlu1 %v1972_v12, %s3765_s27  ;;  %v2303_v12 = vmul.bf16 %v2298_v54, %v2230_v2  ;;  %v1253_v13 = vrot.slane %v1246_v14, %v3823_v21  ;;  %v2924_v54 = vcombine.low %v4272_v16, %v4272_v16  ;;  %v1476_v53 = vmul.bf16 %v1470_v17, %v1406_v19  ;;  %v319_v19 = vld [vmem:[#allocation2 + $0x8] sm:$0x3] }
  0xda   : > { %v1598_v2 = vcombine.high %v4280_v61, %v4280_v61  ;;  %v674_v14 = vcombine.high %v4246_v59, %v4246_v59 }
  0xdb   : > { %1155 = vrot.lane.b32.xlu0 %v1140_v24, %s3759_s9  ;;  %v2321_v24 = vcombine.low %v2303_v12, %v2303_v12  ;;  %v2931_v16 = vrot.slane %v2924_v54, %v3823_v21  ;;  %v1494_v11 = vcombine.low %v1476_v53, %v1476_v53 }
  0xdc   : > { %v688_v54 = vrot.slane %v674_v14, %v3823_v21 }
  0xdd   : > { %2331 = vrot.lane.b32.xlu1 %v2320_v26, %s3753_s19  ;;  %v4305_v41 = vpop.permute.xlu1 %781  ;;  %v2328_v30 = vrot.slane %v2321_v24, %v3823_v21  ;;  %v1501_v61 = vrot.slane %v1494_v11, %v3823_v21 }
  0xde   : > { %v783_v62 = vrot.slane %v4305_v41, 6 }
  0xdf   : > { %2949 = vrot.lane.b32.xlu0 %v2938_v28, %s3760_s21 }
  0xe0   : > { %v4329_v50 = vpop.permute.xlu0 %894  ;;  %v784_v9 = vsel %vm662_vm6, %v783_v62, %v4305_v41 }
  0xe1   : > { %1620 = vrot.lane.b32.xlu1 %v1605_v8, %s3761_s25  ;;  %v2535_v8 = vcombine.low %v4221_v46, %v4221_v46  ;;  %v4424_v12 = vmul.bf16 %v4246_v59, %v784_v9  ;;  %v896_v24 = vrot.slane %v4329_v50, 6 }
  0xe3   : > { %2104 = vrot.lane.b32.xlu0 %v2099_v35, %s3764_s10  ;;  %v1358_v35 = vsel %vm1357_vm14, %v1356_v25, %v4290_v29  ;;  %v2542_v43 = vrot.slane %v2535_v8, %v3823_v21  ;;  %v805_v3 = vrot.slane %v4424_v12, %v3823_v21 }
  0xe4   : > { %v1361_v44 = vmul.bf16 %v1358_v35, %v4246_v59 }
  0xe5   : > { %1875 = vrot.lane.b32.xlu1 %v1870_v18, %s3766_s6  ;;  %v1243_v18 = vmul.bf16 %v1237_v60, %v1173_v1 }
  0xe6   : > { %v4323_v49 = vpop.permute.xlu1 %1010  ;;  %v1365_v60 = vcombine.high %v1361_v44, %v1361_v44 }
  0xe7   : > { %1758 = vrot.lane.b32.xlu0 %v1743_v42, %s3762_s20  ;;  %v2695_v42 = vcombine.low %v4233_v51, %v4233_v51  ;;  %v1261_v63 = vcombine.low %v1243_v18, %v1243_v18  ;;  %v1965_v51 = vcombine.high %v4249_v20, %v4249_v20  ;;  %v1012_v1 = vrot.slane %v4323_v49, 6 }
  0xe9   : > { %2832 = vrot.lane.b32.xlu1 %v2822_v32, %s3754_s28  ;;  %v1472_v32 = vsel %vm1471_vm8, %v1470_v17, %v4314_v45  ;;  %v2702_v48 = vrot.slane %v2695_v42, %v3823_v21  ;;  %v1268_v45 = vrot.slane %v1261_v63, %v3823_v21 }
  0xeb   : > { %2443 = vrot.lane.b32.xlu0 %v2433_v31, %s3751_s7  ;;  %v4339_v58 = vpop.permute.xlu1 %385  ;;  %v1750_v31 = vrot.slane %v1736_v37, %v3823_v21 }
  0xec   : > { %v387_v42 = vrot.slane %v4339_v58, 6 }
  0xed   : > { %2951 = vrot.lane.b32.xlu1 %v2946_v7, %s3760_s21  ;;  %v1475_v7 = vmul.bf16 %v1472_v32, %v4246_v59 }
  0xee   : > { %v4348_v5 = vpop.permute.xlu0 %266  ;;  %v389_v63 = vsel %vm388_vm9, %v387_v42, %v4339_v58 }
  0xef   : > { %2562 = vrot.lane.b32.xlu0 %v2557_v39, %s3758_s30  ;;  %v1979_v39 = vrot.slane %v1965_v51, %v3823_v21  ;;  %v1479_v20 = vcombine.low %v1475_v7, %v1475_v7  ;;  %v268_v37 = vrot.slane %v4348_v5, 6  ;;  %v1493_v18 = vrot.slane %v1475_v7, %v3823_v21 }
  0xf1   : > { %3061 = vrot.lane.b32.xlu1 %v3051_v57, %s3759_s9  ;;  %v1379_v57 = vrot.slane %v1365_v60, %v3823_v21 }
  0xf3   : > { %2722 = vrot.lane.b32.xlu0 %v2717_v40, %s3755_s8  ;;  %v1640_v40 = vcombine.low %v1638_v52, %v1638_v52  ;;  %v393_v52 = vmul.bf16 %v387_v42, %v319_v19 }
  0xf5   : > { %1871 = vrot.lane.b32.xlu1 %v1855_v6, %s3766_s6  ;;  %v4362_v15 = vpop.permute.xlu1 %618  ;;  %3483 = vst.sshfl [vmem:[#allocation3 + $0x60] sm:$0xf0 pattern:$0x76325410] %v1640_v40  ;;  %v1486_v6 = vrot.slane %v1479_v20, %v3823_v21 }
  0xf6   : > { %v620_v40 = vrot.slane %v4362_v15, 6 }
  0xf7   : > { %2100 = vrot.lane.b32.xlu0 %v2084_v22, %s3764_s10  ;;  %v1612_v22 = vrot.slane %v1598_v2, %v3823_v21 }
  0xf8   : > { %v4366_v23 = vpop.permute.xlu0 %500 }
  0xf9   : > { %1157 = vrot.lane.b32.xlu1 %v1147_v4, %s3759_s9  ;;  %v2602_v26 = vpop.permute.xlu1 %2601  ;;  %v715_v4 = vld [vmem:[#allocation2 + $0x8] sm:$0x3] }
  0xfa   : > { %v2607_v28 = vrot.slane %v2602_v26, 4  ;;  %v788_v41 = vmul.bf16 %v783_v62, %v715_v4 }
  0xfb   : > { %2214 = vrot.lane.b32.xlu0 %v2204_v27, %s3752_s12  ;;  %v791_v27 = vcombine.low %v4424_v12, %v4424_v12 }
  0xfc   : > { %v2604_v10 = vpop.permute.xlu0 %2603 }
  0xfd   : > { %1269 = vrot.lane.b32.xlu1 %v1253_v13, %s3756_s14  ;;  %v2608_v33 = vrot.slane %v2604_v10, 4  ;;  %v2606_v36 = vpop.permute.xlu1 %2605  ;;  %v1260_v13 = vrot.slane %v4346_v0, %v3823_v21  ;;  %v1372_v0 = vrot.slane %v1361_v44, %v3823_v21  ;;  %v798_v8 = vrot.slane %v791_v27, %v3823_v21 }
  0xfe   : > { %v2609_v38 = vrot.slane %v2606_v36, 4  ;;  %v944_v36 = vld [vmem:[#allocation2 + $0x8] sm:$0x3] }
  0xff   : > { %2333 = vrot.lane.b32.xlu0 %v2328_v30, %s3753_s19  ;;  %v2610_v46 = vsel %vm308_vm15, %v2607_v28, %v2608_v33  ;;  %v897_v28 = vsel %vm4767_vm3, %v896_v24, %v4329_v50  ;;  %v806_v30 = vcombine.low %v788_v41, %v788_v41  ;;  %v552_v41 = vld [vmem:[#allocation2 + $0x8] sm:$0x3] }
 0x100   : > { %v2611_v55 = vsel %vm706_vm7, %v2602_v26, %v2610_v46  ;;  %v2612_v34 = vsel %vm308_vm15, %v2608_v33, %v2609_v38  ;;  %v1288_v26 = vld [vmem:[#allocation2 + $0x8] sm:$0x3]  ;;  %v900_v33 = vmul.bf16 %v4246_v59, %v897_v28  ;;  %v681_v38 = vrot.slane %v4246_v59, %v3823_v21 }
 0x101   : > { %2947 = vrot.lane.b32.xlu1 %v2931_v16, %s3760_s21  ;;  %2616 = vst [vmem:[#allocation3 + $0xb0] sm:$0x33] %v2611_v55  ;;  %v2613_v47 = vsel %vm706_vm7, %v2604_v10, %v2612_v34  ;;  %v1362_v10 = vmul.bf16 %v1356_v25, %v1288_v26  ;;  %v1013_v16 = vsel %vm429_vm10, %v1012_v1, %v4323_v49 }
 0x102   : > { %2617 = vst [vmem:[#allocation3 + $0xb8] sm:$0x33] %v2613_v47  ;;  %v813_v29 = vrot.slane %v806_v30, %v3823_v21  ;;  %v904_v25 = vcombine.high %v900_v33, %v900_v33  ;;  %v4458_v17 = vmul.bf16 %v4246_v59, %v1013_v16  ;;  %v1017_v49 = vmul.bf16 %v1012_v1, %v944_v36  ;;  %v438_v36 = vld [vmem:[#allocation2 + $0x8] sm:$0x3] }
 0x103   : > { %2558 = vrot.lane.b32.xlu0 %v2542_v43, %s3758_s30  ;;  %v1386_v35 = vrot.slane %v1362_v10, %v3823_v21  ;;  %v270_v43 = vsel %vm269_vm2, %v268_v37, %v4348_v5  ;;  %v911_v11 = vrot.slane %v900_v33, %v3823_v21  ;;  %v626_v26 = vmul.bf16 %v620_v40, %v552_v41 }
 0x104   : > { %v1020_v46 = vcombine.low %v4458_v17, %v4458_v17  ;;  %v918_v55 = vrot.slane %v904_v25, %v3823_v21  ;;  %v1035_v34 = vcombine.low %v1017_v49, %v1017_v49  ;;  %v273_v32 = vmul.bf16 %v4246_v59, %v270_v43  ;;  %v4495_v20 = vpop.permute.xlu0 %2834 }
 0x105   : > { %1760 = vrot.lane.b32.xlu1 %v1750_v31, %s3762_s20  ;;  %v3450_v31 = vld.sshfl [vmem:[#allocation2 + $0x8] sm:$0x3 pattern:$0x76325410] }
 0x106   : > { %v1027_v47 = vrot.slane %v1020_v46, %v3823_v21  ;;  %v277_v60 = vcombine.high %v273_v32, %v273_v32  ;;  %v1042_v7 = vrot.slane %v1035_v34, %v3823_v21  ;;  %v284_v30 = vrot.slane %v273_v32, %v3823_v21 }
 0x107   : > { %2718 = vrot.lane.b32.xlu0 %v2702_v48, %s3755_s8  ;;  %v392_v48 = vmul.bf16 %v4246_v59, %v389_v63 }
 0x109   : > { %1273 = vrot.lane.b32.xlu1 %v1268_v45, %s3756_s14  ;;  %v502_v45 = vrot.slane %v4366_v23, 6  ;;  %v396_v53 = vcombine.low %v392_v48, %v392_v48 }
 0x10b   : > { %1989 = vrot.lane.b32.xlu0 %v1979_v39, %s3765_s27  ;;  %v832_v39 = vld [vmem:[#allocation2 + $0x8] sm:$0x3]  ;;  %v504_v62 = vsel %vm503_vm0, %v502_v45, %v4366_v23  ;;  %v403_v12 = vrot.slane %v396_v53, %v3823_v21  ;;  %v4513_v23 = vpop.permute.xlu0 %3063 }
 0x10c   : > { %v901_v2 = vmul.bf16 %v896_v24, %v832_v39  ;;  %v507_v9 = vmul.bf16 %v4246_v59, %v504_v62  ;;  %v2838_v62 = vrot.slane %v4495_v20, 4 }
 0x10d   : > { %1389 = vrot.lane.b32.xlu1 %v1379_v57, %s3757_s22  ;;  %v291_v57 = vrot.slane %v277_v60, %v3823_v21 }
 0x10e   : > { %v925_v50 = vrot.slane %v901_v2, %v3823_v21  ;;  %v511_v4 = vcombine.high %v507_v9, %v507_v9  ;;  %v518_v46 = vrot.slane %v507_v9, %v3823_v21 }
 0x10f   : > { %2329 = vrot.lane.b32.xlu0 %v2313_v56, %s3753_s19 }
 0x111   : > { %1502 = vrot.lane.b32.xlu1 %v1486_v6, %s3763_s26  ;;  %v411_v6 = vcombine.low %v393_v52, %v393_v52 }
 0x112   : > { %v4475_v44 = vpop.permute.xlu1 %2445 }
 0x113   : > { %1622 = vrot.lane.b32.xlu0 %v1612_v22, %s3761_s25  ;;  %v622_v22 = vsel %vm621_vm5, %v620_v40, %v4362_v15  ;;  %v418_v24 = vrot.slane %v411_v6, %v3823_v21  ;;  %v1034_v15 = vrot.slane %v4458_v17, %v3823_v21  ;;  %v410_v17 = vrot.slane %v392_v48, %v3823_v21 }
 0x114   : > { %v625_v14 = vmul.bf16 %v4246_v59, %v622_v22  ;;  %v525_v59 = vrot.slane %v511_v4, %v3823_v21  ;;  %v2449_v6 = vrot.slane %v4475_v44, 4 }
 0x115   : > { %1506 = vrot.lane.b32.xlu1 %v1501_v61, %s3763_s26 }
 0x116   : > { %v629_v28 = vcombine.low %v625_v14, %v625_v14  ;;  %v643_v34 = vrot.slane %v625_v14, %v3823_v21 }
 0x117   : > { %1271 = vrot.lane.b32.xlu0 %v1260_v13, %s3756_s14 }
 0x119   : > { %698 = vrot.lane.b32.xlu1 %v688_v54, %s3768_s11  ;;  %v204_v54 = vld [vmem:[#allocation2 + $0x8] sm:$0x3] }
 0x11a   : > { %v274_v1 = vmul.bf16 %v268_v37, %v204_v54 }
 0x11b   : > { %1387 = vrot.lane.b32.xlu0 %v1372_v0, %s3757_s22  ;;  %v636_v0 = vrot.slane %v629_v28, %v3823_v21 }
 0x11d   : > { %814 = vrot.lane.b32.xlu1 %v798_v8, %s3755_s8  ;;  %v644_v8 = vcombine.low %v626_v26, %v626_v26 }
 0x11f   : > { %1391 = vrot.lane.b32.xlu0 %v1386_v35, %s3757_s22  ;;  %v298_v35 = vrot.slane %v274_v1, %v3823_v21  ;;  %v651_v5 = vrot.slane %v644_v8, %v3823_v21  ;;  %s3570_s22 = sshll.u32 %s4775_s16, 6 }
 0x121   : > { %818 = vrot.lane.b32.xlu1 %v813_v29, %s3755_s8 }
 0x123   : > { %1504 = vrot.lane.b32.xlu0 %v1493_v18, %s3763_s26  ;;  %v508_v18 = vmul.bf16 %v502_v45, %v438_v36 }
 0x125   : > { %928 = vrot.lane.b32.xlu1 %v918_v55, %s3754_s28  ;;  %v532_v55 = vrot.slane %v508_v18, %v3823_v21  ;;  %v3106_v21 = vld [vmem:[%s4763_s3] sm:$0xff] }
 0x127   : > { %696 = vrot.lane.b32.xlu0 %v681_v38, %s3768_s11 }
 0x129   : > { %1043 = vrot.lane.b32.xlu1 %v1027_v47, %s3760_s21  ;;  %v4484_v51 = vpop.permute.xlu1 %2216 }
 0x12b   : > { %700 = vrot.lane.b32.xlu0 %v3450_v31, %s3768_s11 }
 0x12d   : > { %1047 = vrot.lane.b32.xlu1 %v1042_v7, %s3760_s21  ;;  %v4493_v58 = vpop.permute.xlu1 %2441 }
 0x12f   : > { %816 = vrot.lane.b32.xlu0 %v805_v3, %s3755_s8  ;;  %v3107_v3 = vld [vmem:[%s4763_s3 + $0x8] sm:$0xf] }
 0x131   : > { %301 = vrot.lane.b32.xlu1 %v291_v57, %s3752_s12  ;;  %v4506_v56 = vpop.permute.xlu1 %1991 }
 0x133   : > { %926 = vrot.lane.b32.xlu0 %v911_v11, %s3754_s28 }
 0x135   : > { %419 = vrot.lane.b32.xlu1 %v403_v12, %s3753_s19  ;;  %v4517_v61 = vpop.permute.xlu1 %2102  ;;  %v2447_v12 = vrot.slane %v4493_v58, 4 }
 0x136   : > { %v2107_v31 = vrot.slane %v4517_v61, 4 }
 0x137   : > { %930 = vrot.lane.b32.xlu0 %v925_v50, %s3754_s28 }
 0x139   : > { %v4522_v27 = vpop.permute.xlu0 %1159  ;;  %423 = vrot.lane.b32.xlu1 %v418_v24, %s3753_s19  ;;  %v4527_v13 = vpop.permute.xlu1 %2212 }
 0x13b   : > { %1045 = vrot.lane.b32.xlu0 %v1034_v15, %s3760_s21  ;;  %s197_s21 = scalar_lea.vmem %s4764_s4, %s3570_s22 }
 0x13d   : > { %v2831_v10 = vpop.permute.xlu0 %2830  ;;  %535 = vrot.lane.b32.xlu1 %v525_v59, %s3751_s7 }
 0x13e   : > { %v2836_v2 = vrot.slane %v2831_v10, 4 }
 0x13f   : > { %299 = vrot.lane.b32.xlu0 %v284_v30, %s3752_s12  ;;  %v4537_v33 = vpop.permute.xlu1 %1624 }
 0x141   : > { %v4539_v16 = vpop.permute.xlu0 %3059  ;;  %652 = vrot.lane.b32.xlu1 %v636_v0, %s3758_s30 }
 0x143   : > { %303 = vrot.lane.b32.xlu0 %v298_v35, %s3752_s12  ;;  %v4545_v29 = vpop.permute.xlu1 %2560  ;;  %v3067_v35 = vrot.slane %v4513_v23, 4 }
 0x144   : > { %v2565_v1 = vrot.slane %v4545_v29, 4 }
 0x145   : > { %v4547_v25 = vpop.permute.xlu0 %1762  ;;  %656 = vrot.lane.b32.xlu1 %v651_v5, %s3758_s30 }
 0x147   : > { %421 = vrot.lane.b32.xlu0 %v410_v17, %s3753_s19  ;;  %v4552_v37 = vpop.permute.xlu1 %2720 }
 0x149   : > { %v4554_v49 = vpop.permute.xlu0 %1873  ;;  %3115 = vperm.xlu1 %3599, %v3107_v3  }
 0x14a   : > { %v1878_v7 = vrot.slane %v4554_v49, 4 }
 0x14b   : > { %533 = vrot.lane.b32.xlu0 %v518_v46, %s3751_s7  ;;  %v4558_v38 = vpop.permute.xlu1 %1987  ;;  %v2725_v46 = vrot.slane %v4552_v37, 4 }
 0x14d   : > { %v4561_v42 = vpop.permute.xlu0 %1155 }
 0x14f   : > { %537 = vrot.lane.b32.xlu0 %v532_v55, %s3751_s7  ;;  %v4564_v43 = vpop.permute.xlu1 %2331 }
 0x151   : > { %v4567_v32 = vpop.permute.xlu0 %2949 }
 0x152   : > { %v2954_v20 = vrot.slane %v4567_v32, 4 }
 0x153   : > { %654 = vrot.lane.b32.xlu0 %v643_v34, %s3758_s30  ;;  %v4570_v47 = vpop.permute.xlu1 %1620 }
 0x155   : > { %v2105_v63 = vpop.permute.xlu0 %2104 }
 0x156   : > { %v2108_v48 = vrot.slane %v2105_v63, 4 }
 0x157   : > { %v1876_v60 = vpop.permute.xlu1 %1875  ;;  %3110 = vperm.xlu0 %3598, %v3106_v21  }
 0x158   : > { %v2111_v19 = vsel %vm308_vm15, %v2107_v31, %v2108_v48  ;;  %v1879_v45 = vrot.slane %v1876_v60, 4 }
 0x159   : > { %v2112_v39 = vsel %vm1238_vm13, %v4517_v61, %v2111_v19  ;;  %v4585_v52 = vpop.permute.xlu0 %1758 }
 0x15a   : > { %2116 = vst [vmem:[#allocation3 + $0x88] sm:$0xcc] %v2112_v39  ;;  %v1882_v53 = vsel %vm308_vm15, %v1878_v7, %v1879_v45 }
 0x15b   : > { %v1883_v57 = vsel %vm1471_vm8, %v4554_v49, %v1882_v53  ;;  %v2833_v40 = vpop.permute.xlu1 %2832 }
 0x15c   : > { %1887 = vst [vmem:[#allocation3 + $0x78] sm:$0xcc] %v1883_v57  ;;  %v2837_v11 = vrot.slane %v2833_v40, 4 }
 0x15d   : > { %v2444_v9 = vpop.permute.xlu0 %2443 }
 0x15e   : > { %v2448_v22 = vrot.slane %v2444_v9, 4  ;;  %v2839_v50 = vsel %vm308_vm15, %v2836_v2, %v2837_v11  ;;  %v2841_v14 = vsel %vm308_vm15, %v2837_v11, %v2838_v62  ;;  %v1161_v62 = vrot.slane %v4561_v42, 4 }
 0x15f   : > { %v2840_v4 = vsel %vm503_vm0, %v2831_v10, %v2839_v50  ;;  %v2842_v24 = vsel %vm503_vm0, %v2833_v40, %v2841_v14  ;;  %v2952_v41 = vpop.permute.xlu1 %2951  ;;  %v1163_v40 = vrot.slane %v4522_v27, 4 }
 0x160   : > { %v2450_v15 = vsel %vm308_vm15, %v2447_v12, %v2448_v22  ;;  %v2452_v54 = vsel %vm308_vm15, %v2448_v22, %v2449_v6  ;;  %2845 = vst [vmem:[#allocation3 + $0xc0] sm:$0x33] %v2840_v4  ;;  %2846 = vst [vmem:[#allocation3 + $0xc8] sm:$0x33] %v2842_v24  ;;  %v2955_v44 = vrot.slane %v2952_v41, 4  ;;  %v2220_v6 = vrot.slane %v4484_v51, 4 }
 0x161   : > { %v2451_v26 = vsel %vm4767_vm3, %v4493_v58, %v2450_v15  ;;  %v2453_v28 = vsel %vm4767_vm3, %v2444_v9, %v2452_v54  ;;  %v2563_v59 = vpop.permute.xlu0 %2562  ;;  %v3065_v58 = vrot.slane %v4539_v16, 4  ;;  %vm3263_vm3 = vcmask 1045504  }
 0x162   : > { %2456 = vst [vmem:[#allocation3 + $0xa0] sm:$0x33] %v2451_v26  ;;  %2457 = vst [vmem:[#allocation3 + $0xa8] sm:$0x33] %v2453_v28  ;;  %v2566_v10 = vrot.slane %v2563_v59, 4  ;;  %v2958_v30 = vsel %vm308_vm15, %v2954_v20, %v2955_v44 }
 0x163   : > { %v2959_v0 = vsel %vm388_vm9, %v4567_v32, %v2958_v30  ;;  %v3062_v8 = vpop.permute.xlu1 %3061 }
 0x164   : > { %v2569_v5 = vsel %vm308_vm15, %v2565_v1, %v2566_v10  ;;  %2963 = vst [vmem:[#allocation3 + $0xc8] sm:$0xcc] %v2959_v0  ;;  %v3066_v17 = vrot.slane %v3062_v8, 4 }
 0x165   : > { %v2570_v36 = vsel %vm662_vm6, %v4545_v29, %v2569_v5  ;;  %v2723_v18 = vpop.permute.xlu0 %2722 }
 0x166   : > { %2574 = vst [vmem:[#allocation3 + $0xa8] sm:$0xcc] %v2570_v36  ;;  %v2726_v55 = vrot.slane %v2723_v18, 4  ;;  %v3068_v34 = vsel %vm308_vm15, %v3065_v58, %v3066_v17  ;;  %v3070_v23 = vsel %vm308_vm15, %v3066_v17, %v3067_v35  ;;  %v1766_v36 = vrot.slane %v4547_v25, 4 }
 0x167   : > { %v3069_v63 = vsel %vm269_vm2, %v4539_v16, %v3068_v34  ;;  %v3071_v48 = vsel %vm269_vm2, %v3062_v8, %v3070_v23  ;;  %v1872_v60 = vpop.permute.xlu1 %1871  ;;  %v1764_v18 = vrot.slane %v4585_v52, 4 }
 0x168   : > { %v2729_v19 = vsel %vm308_vm15, %v2725_v46, %v2726_v55  ;;  %3074 = vst [vmem:[#allocation3 + $0xd0] sm:$0x33] %v3069_v63  ;;  %3075 = vst [vmem:[#allocation3 + $0xd8] sm:$0x33] %v3071_v48  ;;  %v1877_v45 = vrot.slane %v1872_v60, 4 }
 0x169   : > { %v2730_v21 = vsel %vm621_vm5, %v4552_v37, %v2729_v19  ;;  %v2101_v3 = vpop.permute.xlu0 %2100 }
 0x16a   : > { %2734 = vst [vmem:[#allocation3 + $0xb8] sm:$0xcc] %v2730_v21  ;;  %v2106_v39 = vrot.slane %v2101_v3, 4  ;;  %v1880_v16 = vsel %vm308_vm15, %v1877_v45, %v1878_v7  ;;  %v2218_v7 = vrot.slane %v4527_v13, 4  ;;  %v1995_v45 = vrot.slane %v4506_v56, 4 }
 0x16b   : > { %v1881_v53 = vsel %vm1471_vm8, %v1872_v60, %v1880_v16  ;;  %v1158_v57 = vpop.permute.xlu1 %1157  ;;  %v1993_v21 = vrot.slane %v4558_v38, 4 }
 0x16c   : > { %v2109_v2 = vsel %vm308_vm15, %v2106_v39, %v2107_v31  ;;  %1886 = vst [vmem:[#allocation3 + $0x70] sm:$0xcc] %v1881_v53  ;;  %v1162_v11 = vrot.slane %v1158_v57, 4 }
 0x16d   : > { %v2110_v9 = vsel %vm1238_vm13, %v2101_v3, %v2109_v2  ;;  %v2215_v49 = vpop.permute.xlu0 %2214 }
 0x16e   : > { %2115 = vst [vmem:[#allocation3 + $0x80] sm:$0xcc] %v2110_v9  ;;  %v2219_v12 = vrot.slane %v2215_v49, 4  ;;  %v1164_v27 = vsel %vm308_vm15, %v1161_v62, %v1162_v11  ;;  %v1166_v22 = vsel %vm308_vm15, %v1162_v11, %v1163_v40 }
 0x16f   : > { %v1165_v61 = vsel %vm269_vm2, %v4561_v42, %v1164_v27  ;;  %v1167_v31 = vsel %vm269_vm2, %v1158_v57, %v1166_v22  ;;  %v4646_v50 = vpop.permute.xlu1 %1269  ;;  %v3698_v51 = vld [vmem:[#allocation3 + $0xcc] ss:$16 sps:$4 sm:$0x3f]   ;;  %v3700_v24 = vld [vmem:[#allocation3 + $0xc8] ss:$16 sps:$4 sm:$0x3f]  }
 0x170   : > { %v2221_v14 = vsel %vm308_vm15, %v2218_v7, %v2219_v12  ;;  %v2223_v4 = vsel %vm308_vm15, %v2219_v12, %v2220_v6  ;;  %1170 = vst [vmem:[#allocation3 + $0x40] sm:$0x33] %v1165_v61  ;;  %1171 = vst [vmem:[#allocation3 + $0x48] sm:$0x33] %v1167_v31  ;;  %3565 = vmatprep.subr.msk.bf16.mxu1 %vm3263_vm3, %v3698_v51  ;;  %v2336_v42 = vrot.slane %v4564_v43, 4  ;;  %v3271_v26 = vsel %vm3263_vm3, %v3700_v24, 0 }
 0x171   : > { %v2222_v41 = vsel %vm310_vm4, %v4527_v13, %v2221_v14  ;;  %v2224_v15 = vsel %vm310_vm4, %v2215_v49, %v2223_v4  ;;  %v2334_v54 = vpop.permute.xlu0 %2333  ;;  %v3701_v28 = vld [vmem:[#allocation3 + $0xac] ss:$16 sps:$4 sm:$0xff]   ;;  %3322 = vmatpush1.bf16.msra.mxu1 %v3271_v26  ;;  %v3703_v8 = vld [vmem:[#allocation3 + $0xa8] ss:$16 sps:$4 sm:$0xff]   ;;  %v1626_v7 = vrot.slane %v4570_v47, 4  ;;  %vm4768_vm2 = vcmask 64512  }
 0x172   : > { %2227 = vst [vmem:[#allocation3 + $0x90] sm:$0x33] %v2222_v41  ;;  %2228 = vst [vmem:[#allocation3 + $0x98] sm:$0x33] %v2224_v15  ;;  %v2337_v44 = vrot.slane %v2334_v54, 4  ;;  %3323 = vmatprep.subr.bf16.mxu1 %v3701_v28  ;;  %v1275_v41 = vrot.slane %v4646_v50, 4 }
 0x173   : > { %v2948_v59 = vpop.permute.xlu1 %2947 }
 0x174   : > { %v2340_v10 = vsel %vm308_vm15, %v2336_v42, %v2337_v44  ;;  %v2953_v30 = vrot.slane %v2948_v59, 4 }
 0x175   : > { %v2341_v13 = vsel %vm429_vm10, %v4564_v43, %v2340_v10  ;;  %v2559_v0 = vpop.permute.xlu0 %2558  ;;  %3324 = vmatpush1.bf16.msra.mxu1 %v3703_v8 }
 0x176   : > { %2345 = vst [vmem:[#allocation3 + $0x98] sm:$0xcc] %v2341_v13  ;;  %v2564_v35 = vrot.slane %v2559_v0, 4  ;;  %v2956_v58 = vsel %vm308_vm15, %v2953_v30, %v2954_v20 }
 0x177   : > { %v2957_v5 = vsel %vm388_vm9, %v2948_v59, %v2956_v58  ;;  %v1761_v17 = vpop.permute.xlu1 %1760 }
 0x178   : > { %v2567_v43 = vsel %vm308_vm15, %v2564_v35, %v2565_v1  ;;  %2962 = vst [vmem:[#allocation3 + $0xc0] sm:$0xcc] %v2957_v5  ;;  %v1765_v55 = vrot.slane %v1761_v17, 4 }
 0x179   : > { %v2568_v34 = vsel %vm662_vm6, %v2559_v0, %v2567_v43  ;;  %v2719_v23 = vpop.permute.xlu0 %2718 }
 0x17a   : > { %2573 = vst [vmem:[#allocation3 + $0xa0] sm:$0xcc] %v2568_v34  ;;  %v2724_v32 = vrot.slane %v2719_v23, 4  ;;  %v1767_v20 = vsel %vm308_vm15, %v1764_v18, %v1765_v55  ;;  %v1769_v63 = vsel %vm308_vm15, %v1765_v55, %v1766_v36 }
 0x17b   : > { %v1768_v25 = vsel %vm1590_vm11, %v4585_v52, %v1767_v20  ;;  %v1770_v48 = vsel %vm1590_vm11, %v1761_v17, %v1769_v63  ;;  %v1274_v60 = vpop.permute.xlu1 %1273 }
 0x17c   : > { %v2727_v29 = vsel %vm308_vm15, %v2724_v32, %v2725_v46  ;;  %1773 = vst [vmem:[#allocation3 + $0x70] sm:$0x33] %v1768_v25  ;;  %1774 = vst [vmem:[#allocation3 + $0x78] sm:$0x33] %v1770_v48  ;;  %v1277_v15 = vrot.slane %v1274_v60, 4 }
 0x17d   : > { %v2728_v1 = vsel %vm621_vm5, %v2719_v23, %v2727_v29  ;;  %v1990_v19 = vpop.permute.xlu0 %1989 }
 0x17e   : > { %2733 = vst [vmem:[#allocation3 + $0xb0] sm:$0xcc] %v2728_v1  ;;  %v1994_v3 = vrot.slane %v1990_v19, 4 }
 0x17f   : > { %v4680_v39 = vpop.permute.xlu1 %1389  ;;  %v3704_v52 = vld [vmem:[#allocation3 + $0xc4] ss:$16 sps:$4 sm:$0x3f]   ;;  %v3706_v53 = vld [vmem:[#allocation3 + $0xc0] ss:$16 sps:$4 sm:$0x3f]  }
 0x180   : > { %v1996_v16 = vsel %vm308_vm15, %v1993_v21, %v1994_v3  ;;  %v1998_v37 = vsel %vm308_vm15, %v1994_v3, %v1995_v45  ;;  %3563 = vmatprep.subr.msk.bf16.mxu0 %vm3263_vm3, %v3704_v52  ;;  %v3265_v62 = vsel %vm3263_vm3, %v3706_v53, 0  ;;  %v1394_v13 = vrot.slane %v4680_v39, 4 }
 0x181   : > { %v1997_v46 = vsel %vm1357_vm14, %v4558_v38, %v1996_v16  ;;  %v1999_v57 = vsel %vm1357_vm14, %v1990_v19, %v1998_v37  ;;  %v2330_v40 = vpop.permute.xlu0 %2329  ;;  %3279 = vmatpush1.bf16.msra.mxu0 %v3265_v62  ;;  %v1628_v38 = vrot.slane %v4537_v33, 4  ;;  %vm4770_vm3 = vcmask 56320  }
 0x182   : > { %2002 = vst [vmem:[#allocation3 + $0x80] sm:$0x33] %v1997_v46  ;;  %2003 = vst [vmem:[#allocation3 + $0x88] sm:$0x33] %v1999_v57  ;;  %v2335_v56 = vrot.slane %v2330_v40, 4 }
 0x183   : > { %v4689_v2 = vpop.permute.xlu1 %1502  ;;  %v3092_v58 = vld [vmem:[#allocation3 + $0x70] sm:$0xff]  ;;  %vm4771_vm8 = vmmov %vm4770_vm3 }
 0x184   : > { %v2338_v11 = vsel %vm308_vm15, %v2335_v56, %v2336_v42  ;;  %v1508_v25 = vrot.slane %v4689_v2, 4 }
 0x185   : > { %v2339_v6 = vsel %vm429_vm10, %v2330_v40, %v2338_v11  ;;  %v1623_v9 = vpop.permute.xlu0 %1622  ;;  %v3707_v49 = vld [vmem:[#allocation3 + $0xa4] ss:$16 sps:$4 sm:$0xff]   ;;  %v3712_v27 = vld [vmem:[#allocation3 + $0xa0] ss:$16 sps:$4 sm:$0xff]  }
 0x186   : > { %2344 = vst [vmem:[#allocation3 + $0x90] sm:$0xcc] %v2339_v6  ;;  %v1627_v12 = vrot.slane %v1623_v9, 4  ;;  %3280 = vmatprep.subr.bf16.mxu0 %v3707_v49 }
 0x187   : > { %v1507_v22 = vpop.permute.xlu1 %1506  ;;  %3281 = vmatpush1.bf16.msra.mxu0 %v3712_v27 }
 0x188   : > { %v1629_v61 = vsel %vm308_vm15, %v1626_v7, %v1627_v12  ;;  %v1632_v31 = vsel %vm308_vm15, %v1627_v12, %v1628_v38  ;;  %v1510_v48 = vrot.slane %v1507_v22, 4 }
 0x189   : > { %v1631_v51 = vsel %vm1630_vm12, %v4570_v47, %v1629_v61  ;;  %v1633_v14 = vsel %vm1630_vm12, %v1623_v9, %v1632_v31  ;;  %v1272_v4 = vpop.permute.xlu0 %1271  ;;  %v3709_v24 = vld [vmem:[#allocation3 + $0x8c] ss:$16 sps:$4 sm:$0xff]   ;;  %v3711_v33 = vld [vmem:[#allocation3 + $0x88] ss:$16 sps:$4 sm:$0xff]  }
 0x18a   : > { %1636 = vst [vmem:[#allocation3 + $0x60] sm:$0x33] %v1631_v51  ;;  %1637 = vst [vmem:[#allocation3 + $0x68] sm:$0x33] %v1633_v14  ;;  %v1276_v54 = vrot.slane %v1272_v4, 4  ;;  %3325 = vmatprep.subr.bf16.mxu1 %v3709_v24 }
 0x18b   : > { %v699_v42 = vpop.permute.xlu1 %698  ;;  %3326 = vmatpush1.bf16.msra.mxu1 %v3711_v33 }
 0x18c   : > { %v1278_v44 = vsel %vm308_vm15, %v1275_v41, %v1276_v54  ;;  %v1281_v26 = vsel %vm308_vm15, %v1276_v54, %v1277_v15  ;;  %v703_v1 = vrot.slane %v699_v42, 4 }
 0x18d   : > { %v1280_v47 = vsel %vm1279_vm1, %v4646_v50, %v1278_v44  ;;  %v1282_v28 = vsel %vm1279_vm1, %v1272_v4, %v1281_v26  ;;  %v1388_v59 = vpop.permute.xlu0 %1387  ;;  %v3713_v10 = vld [vmem:[#allocation3 + $0x84] ss:$16 sps:$4 sm:$0xff]   ;;  %v3715_v30 = vld [vmem:[#allocation3 + $0x80] ss:$16 sps:$4 sm:$0xff]   ;;  %vm4769_vm1 = vmmov %vm4768_vm2 }
 0x18e   : > { %1285 = vst [vmem:[#allocation3 + $0x40] sm:$0xcc] %v1280_v47  ;;  %1286 = vst [vmem:[#allocation3 + $0x48] sm:$0xcc] %v1282_v28  ;;  %v1393_v0 = vrot.slane %v1388_v59, 4  ;;  %3282 = vmatprep.subr.bf16.mxu0 %v3713_v10 }
 0x18f   : > { %v815_v8 = vpop.permute.xlu1 %814  ;;  %3283 = vmatpush1.bf16.msra.mxu0 %v3715_v30 }
 0x190   : > { %v1396_v35 = vsel %vm308_vm15, %v1393_v0, %v1394_v13  ;;  %v820_v62 = vrot.slane %v815_v8, 4 }
 0x191   : > { %v1398_v5 = vsel %vm4768_vm2, %v1388_v59, %v1396_v35  ;;  %v1392_v17 = vpop.permute.xlu0 %1391  ;;  %v3090_v50 = vld [vmem:[#allocation3 + $0x60] sm:$0xff]  ;;  %v3719_v43 = vld [vmem:[#allocation3 + $0x6c] ss:$16 sps:$4 sm:$0xff]   ;;  %v3721_v34 = vld [vmem:[#allocation3 + $0x68] ss:$16 sps:$4 sm:$0xff]  }
 0x192   : > { %v3717_v36 = vld [vmem:[#allocation3 + $0x64] ss:$16 sps:$4 sm:$0xff]   ;;  %1403 = vst [vmem:[#allocation3 + $0x50] sm:$0x33] %v1398_v5  ;;  %v1395_v18 = vrot.slane %v1392_v17, 4  ;;  %v3547_v55 = vcombine.low %v3090_v50, %v3092_v58  ;;  %3327 = vmatprep.subr.bf16.mxu1 %v3719_v43 }
 0x193   : > { %3284 = vmatprep.subr.bf16.mxu0 %v3717_v36  ;;  %v819_v23 = vpop.permute.xlu1 %818  ;;  %3328 = vmatpush1.bf16.msra.mxu1 %v3721_v34 }
 0x194   : > { %v1399_v32 = vsel %vm308_vm15, %v1394_v13, %v1395_v18  ;;  %3285 = vmatpush1.bf16.msra.mxu0 %v3547_v55  ;;  %v822_v9 = vrot.slane %v819_v23, 4 }
 0x195   : > { %v1400_v20 = vsel %vm4769_vm1, %v4680_v39, %v1399_v32  ;;  %v1505_v63 = vpop.permute.xlu0 %1504 }
 0x196   : > { %1404 = vst [vmem:[#allocation3 + $0x58] sm:$0x33] %v1400_v20  ;;  %v1509_v60 = vrot.slane %v1505_v63, 4 }
 0x197   : > { %v929_v29 = vpop.permute.xlu1 %928 }
 0x198   : > { %v1511_v19 = vsel %vm308_vm15, %v1508_v25, %v1509_v60  ;;  %v1514_v45 = vsel %vm308_vm15, %v1509_v60, %v1510_v48  ;;  %v933_v4 = vrot.slane %v929_v29, 4 }
 0x199   : > { %v1513_v21 = vsel %vm4770_vm3, %v4689_v2, %v1511_v19  ;;  %v1515_v3 = vsel %vm4771_vm8, %v1505_v63, %v1514_v45  ;;  %v697_v52 = vpop.permute.xlu0 %696 }
 0x19a   : > { %1518 = vst [vmem:[#allocation3 + $0x50] sm:$0xcc] %v1513_v21  ;;  %1519 = vst [vmem:[#allocation3 + $0x58] sm:$0xcc] %v1515_v3  ;;  %v702_v39 = vrot.slane %v697_v52, 4 }
 0x19b   : > { %v1044_v16 = vpop.permute.xlu1 %1043 }
 0x19c   : > { %v705_v37 = vsel %vm308_vm15, %v702_v39, %v703_v1  ;;  %v1049_v28 = vrot.slane %v1044_v16, 4 }
 0x19d   : > { %v707_v53 = vsel %vm706_vm7, %v697_v52, %v705_v37  ;;  %v701_v46 = vpop.permute.xlu0 %700 }
 0x19e   : > { %712 = vst [vmem:[#allocation3 + $0x20] sm:$0x33] %v707_v53  ;;  %v704_v57 = vrot.slane %v701_v46, 4 }
 0x19f   : > { %v1048_v40 = vpop.permute.xlu1 %1047 }
 0x1a0   : > { %v708_v56 = vsel %vm308_vm15, %v703_v1, %v704_v57  ;;  %v1051_v59 = vrot.slane %v1048_v40, 4 }
 0x1a1   : > { %v709_v2 = vsel %vm706_vm7, %v699_v42, %v708_v56  ;;  %v817_v11 = vpop.permute.xlu0 %816  ;;  %v3722_v6 = vld [vmem:[#allocation3 + $0x44] ss:$16 sps:$4 sm:$0xff]   ;;  %v3724_v38 = vld [vmem:[#allocation3 + $0x4c] ss:$16 sps:$4 sm:$0xff]   ;;  %v3726_v7 = vld [vmem:[#allocation3 + $0x40] ss:$16 sps:$4 sm:$0xff]  }
 0x1a2   : > { %713 = vst [vmem:[#allocation3 + $0x28] sm:$0x33] %v709_v2  ;;  %v821_v49 = vrot.slane %v817_v11, 4  ;;  %3286 = vmatprep.subr.bf16.mxu0 %v3722_v6  ;;  %v3727_v12 = vld [vmem:[#allocation3 + $0x48] ss:$16 sps:$4 sm:$0xff]   ;;  %3329 = vmatprep.subr.bf16.mxu1 %v3724_v38 }
 0x1a3   : > { %3287 = vmatpush1.bf16.msra.mxu0 %v3726_v7  ;;  %3330 = vmatpush1.bf16.msra.mxu1 %v3727_v12  ;;  %v302_v14 = vpop.permute.xlu1 %301 }
 0x1a4   : > { %v823_v27 = vsel %vm308_vm15, %v820_v62, %v821_v49  ;;  %v825_v22 = vsel %vm308_vm15, %v821_v49, %v822_v9  ;;  %v306_v5 = vrot.slane %v302_v14, 4 }
 0x1a5   : > { %v824_v61 = vsel %vm621_vm5, %v815_v8, %v823_v27  ;;  %v826_v31 = vsel %vm621_vm5, %v817_v11, %v825_v22  ;;  %v927_v51 = vpop.permute.xlu0 %926  ;;  %vm3259_vm5 = vcmask 883712  }
 0x1a6   : > { %829 = vst [vmem:[#allocation3 + $0x20] sm:$0xcc] %v824_v61  ;;  %830 = vst [vmem:[#allocation3 + $0x28] sm:$0xcc] %v826_v31  ;;  %v932_v24 = vrot.slane %v927_v51, 4 }
 0x1a7   : > { %v420_v42 = vpop.permute.xlu1 %419 }
 0x1a8   : > { %v935_v33 = vsel %vm308_vm15, %v932_v24, %v933_v4  ;;  %v425_v23 = vrot.slane %v420_v42, 4 }
 0x1a9   : > { %v936_v41 = vsel %vm503_vm0, %v927_v51, %v935_v33  ;;  %v931_v15 = vpop.permute.xlu0 %930 }
 0x1aa   : > { %941 = vst [vmem:[#allocation3 + $0x30] sm:$0x33] %v936_v41  ;;  %v934_v54 = vrot.slane %v931_v15, 4 }
 0x1ab   : > { %v424_v58 = vpop.permute.xlu1 %423 }
 0x1ac   : > { %v937_v44 = vsel %vm308_vm15, %v933_v4, %v934_v54  ;;  %v427_v25 = vrot.slane %v424_v58, 4 }
 0x1ad   : > { %v938_v26 = vsel %vm503_vm0, %v929_v29, %v937_v44  ;;  %v1046_v47 = vpop.permute.xlu0 %1045  ;;  %vm4772_vm0 = vcmask 580608  }
 0x1ae   : > { %942 = vst [vmem:[#allocation3 + $0x38] sm:$0x33] %v938_v26  ;;  %v1050_v10 = vrot.slane %v1046_v47, 4 }
 0x1af   : > { %v536_v55 = vpop.permute.xlu1 %535 }
 0x1b0   : > { %v1052_v30 = vsel %vm308_vm15, %v1049_v28, %v1050_v10  ;;  %v1054_v13 = vsel %vm308_vm15, %v1050_v10, %v1051_v59 }
 0x1b1   : > { %v1053_v0 = vsel %vm388_vm9, %v1044_v16, %v1052_v30  ;;  %v1055_v8 = vsel %vm388_vm9, %v1046_v47, %v1054_v13  ;;  %v300_v35 = vpop.permute.xlu0 %299  ;;  %v540_v16 = vrot.slane %v536_v55, 4 }
 0x1b2   : > { %1058 = vst [vmem:[#allocation3 + $0x30] sm:$0xcc] %v1053_v0  ;;  %1059 = vst [vmem:[#allocation3 + $0x38] sm:$0xcc] %v1055_v8  ;;  %v305_v17 = vrot.slane %v300_v35, 4 }
 0x1b3   : > { %v653_v52 = vpop.permute.xlu1 %652 }
 0x1b4   : > { %v309_v50 = vsel %vm308_vm15, %v305_v17, %v306_v5  ;;  %v658_v6 = vrot.slane %v653_v52, 4 }
 0x1b5   : > { %v311_v36 = vsel %vm310_vm4, %v300_v35, %v309_v50  ;;  %v304_v18 = vpop.permute.xlu0 %303 }
 0x1b6   : > { %316 = vst [vmem:[#allocation3] sm:$0x33] %v311_v36  ;;  %v307_v43 = vrot.slane %v304_v18, 4 }
 0x1b7   : > { %v657_v56 = vpop.permute.xlu1 %656 }
 0x1b8   : > { %v312_v34 = vsel %vm308_vm15, %v306_v5, %v307_v43  ;;  %v660_v9 = vrot.slane %v657_v56, 4 }
 0x1b9   : > { %v313_v32 = vsel %vm310_vm4, %v302_v14, %v312_v34  ;;  %v422_v20 = vpop.permute.xlu0 %421  ;;  %v3728_v63 = vld [vmem:[#allocation3 + $0x24] ss:$16 sps:$4 sm:$0xff]   ;;  %v3730_v60 = vld [vmem:[#allocation3 + $0x2c] ss:$16 sps:$4 sm:$0xff]   ;;  %v3732_v29 = vld [vmem:[#allocation3 + $0x20] ss:$16 sps:$4 sm:$0xff]  }
 0x1ba   : > { %317 = vst [vmem:[#allocation3 + $0x8] sm:$0x33] %v313_v32  ;;  %v426_v48 = vrot.slane %v422_v20, 4  ;;  %3288 = vmatprep.subr.bf16.mxu0 %v3728_v63  ;;  %v3733_v1 = vld [vmem:[#allocation3 + $0x28] ss:$16 sps:$4 sm:$0xff]   ;;  %3331 = vmatprep.subr.bf16.mxu1 %v3730_v60  ;;  %vm4773_vm4 = vmmov %vm4772_vm0 }
 0x1bb   : > { %3289 = vmatpush1.bf16.msra.mxu0 %v3732_v29  ;;  %3332 = vmatpush1.bf16.msra.mxu1 %v3733_v1  ;;  %v3740_v14 = vld [vmem:[%s4762_s2] sm:$0x3f]  }
 0x1bc   : > { %v428_v19 = vsel %vm308_vm15, %v425_v23, %v426_v48  ;;  %v431_v45 = vsel %vm308_vm15, %v426_v48, %v427_v25 }
 0x1bd   : > { %v430_v21 = vsel %vm429_vm10, %v420_v42, %v428_v19  ;;  %v432_v3 = vsel %vm429_vm10, %v422_v20, %v431_v45  ;;  %v534_v39 = vpop.permute.xlu0 %533 }
 0x1be   : > { %435 = vst [vmem:[#allocation3] sm:$0xcc] %v430_v21  ;;  %436 = vst [vmem:[#allocation3 + $0x8] sm:$0xcc] %v432_v3  ;;  %v539_v37 = vrot.slane %v534_v39, 4 }
 0x1c0   : > { %v542_v53 = vsel %vm308_vm15, %v539_v37, %v540_v16 }
 0x1c1   : > { %v544_v46 = vsel %vm4772_vm0, %v534_v39, %v542_v53  ;;  %v538_v57 = vpop.permute.xlu0 %537 }
 0x1c2   : > { %549 = vst [vmem:[#allocation3 + $0x10] sm:$0x33] %v544_v46  ;;  %v541_v40 = vrot.slane %v538_v57, 4 }
 0x1c4   : > { %v545_v62 = vsel %vm308_vm15, %v540_v16, %v541_v40  ;;  %v3116_v42 = vpop.permute.xlu1 %3115 }
 0x1c5   : > { %v546_v2 = vsel %vm4773_vm4, %v536_v55, %v545_v62  ;;  %v655_v11 = vpop.permute.xlu0 %654 }
 0x1c6   : > { %550 = vst [vmem:[#allocation3 + $0x18] sm:$0x33] %v546_v2  ;;  %v659_v49 = vrot.slane %v655_v11, 4 }
 0x1c8   : > { %v661_v38 = vsel %vm308_vm15, %v658_v6, %v659_v49  ;;  %v664_v7 = vsel %vm308_vm15, %v659_v49, %v660_v9 }
 0x1c9   : > { %v663_v12 = vsel %vm662_vm6, %v653_v52, %v661_v38  ;;  %v665_v27 = vsel %vm662_vm6, %v655_v11, %v664_v7 }
 0x1ca   : > { %668 = vst [vmem:[#allocation3 + $0x10] sm:$0xcc] %v663_v12  ;;  %669 = vst [vmem:[#allocation3 + $0x18] sm:$0xcc] %v665_v27 }
 0x1d1   : > { %v3734_v22 = vld [vmem:[#allocation3 + $0x4] ss:$16 sps:$4 sm:$0xff]   ;;  %v3736_v61 = vld [vmem:[#allocation3 + $0xc] ss:$16 sps:$4 sm:$0xff]   ;;  %v3738_v31 = vld [vmem:[#allocation3] ss:$16 sps:$4 sm:$0xff]  }
 0x1d2   : > { %v3739_v51 = vld [vmem:[#allocation3 + $0x8] ss:$16 sps:$4 sm:$0xff]   ;;  %3290 = vmatprep.subr.bf16.mxu0 %v3734_v22  ;;  %3333 = vmatprep.subr.bf16.mxu1 %v3736_v61  ;;  %v3111_v4 = vpop.permute.xlu0 %3110 }
 0x1d3   : > { %3291 = vmatpush1.bf16.msra.mxu0 %v3738_v31  ;;  %3334 = vmatpush1.bf16.msra.mxu1 %v3739_v51 }
 0x1d6   : > { %3564 = vmatmul.mubr.msk.bf16.vlgmr.msra.gmra.mxu0 %vm3259_vm5, %v3740_v14  ;;  %3566 = vmatmul.mubr.msk.bf16.vlgmr.msra.gmra.mxu1 %vm3259_vm5, %v3740_v14 }
 0x296   : > { %v3310_v24 = vpop.f32.mrf.mxu0  ;;  %v3353_v41 = vpop.f32.mrf.mxu1 }
 0x297   : > { %v3311_v33 = vadd.f32 %v3310_v24, %v3111_v4  ;;  %v3354_v15 = vadd.f32 %v3353_v41, %v3111_v4 }
 0x298   : > { %v3312_v54 = vpop.f32.mrf.mxu0  ;;  %v3355_v26 = vpop.f32.mrf.mxu1 }
 0x299   : > { %3362 = vst [vmem:[%s197_s21] sm:$0xff] %v3311_v33  ;;  %v3313_v44 = vadd.f32 %v3312_v54, %v3111_v4  ;;  %3364 = vst [vmem:[%s197_s21 + $0x10] sm:$0xff] %v3354_v15  ;;  %v3356_v47 = vadd.f32 %v3355_v26, %v3111_v4 }
 0x29a   : > { %v3314_v28 = vpop.f32.mrf.mxu0  ;;  %v3357_v59 = vpop.f32.mrf.mxu1 }
 0x29b   : > { %3363 = vst [vmem:[%s197_s21 + $0x8] sm:$0xff] %v3313_v44  ;;  %v3315_v10 = vadd.f32 %v3314_v28, %v3116_v42  ;;  %3365 = vst [vmem:[%s197_s21 + $0x18] sm:$0xff] %v3356_v47  ;;  %v3358_v30 = vadd.f32 %v3357_v59, %v3116_v42 }
 0x29c   : > { %v3316_v13 = vpop.f32.mrf.mxu0  ;;  %v3359_v8 = vpop.f32.mrf.mxu1 }
 0x29d   : > { %3366 = vst [vmem:[%s197_s21 + $0x20] sm:$0xf] %v3315_v10  ;;  %v3317_v0 = vadd.f32 %v3316_v13, %v3116_v42  ;;  %3368 = vst [vmem:[%s197_s21 + $0x30] sm:$0xf] %v3358_v30  ;;  %v3360_v35 = vadd.f32 %v3359_v8, %v3116_v42 }
 0x29f   : > { %3367 = vst [vmem:[%s197_s21 + $0x28] sm:$0xf] %v3317_v0  ;;  %3369 = vst [vmem:[%s197_s21 + $0x38] sm:$0xf] %v3360_v35 }
 0x2a0 PF: > { %s14_s15 = sadd.s32 1, %s3748_s15  }
 0x2a1   : > { %p11_p4 = scmp.ge.s32.totalorder %s14_s15, 4  }
 0x2a3   :  { %13 = sbr.rel (!%p11_p4) target bundleno = 1 (0x1), region = 66 }

</bundles_post_ra>
